<compile_context>
chip_gen: v7x
topology: tpu7x:2x2x1
jax: 0.10.0
libtpu: 0.0.40
codegen_flags: <defaults>
</compile_context>

<pallas_src>
import jax
import jax.numpy as jnp
from jax.experimental import pallas as pl
from jax.experimental.pallas import tpu as pltpu

IN_DIM = 2
HIDDEN = 256        # hidden dim 200 zero-padded to 256 (lane-dense, MXU-friendly)
HIDDEN_REAL = 200
MIN_TILE_M = 128    # lane-dense minimum
MAX_TILE_M = 1024   # keeps h1/h2 intermediates + weights well under scoped VMEM on all chips


def _round_up(x, m):
    return -(-x // m) * m


def _choose_tile_m(batch):
    """Lane-dense batch tile: multiple of 128, >= ceil(B/2) (so <=2 tiles up to
    B=2048, giving an even split across v7x's 2 TCs), capped at MAX_TILE_M."""
    half = -(-batch // 2)
    tile = _round_up(max(half, 1), 128)
    return max(MIN_TILE_M, min(MAX_TILE_M, tile))


def mlp_kernel(xt_ref, w1_ref, b1_ref, w2_ref, b2_ref, w3_ref, b3_ref, o_ref):
    xt = xt_ref[...]                                   # (2, TILE_M)  lane-dense
    w1 = w1_ref[...]                                   # (HIDDEN, 2)  PyTorch layout

    # Layer 1 (K=2): two outer-product broadcasts on the VPU — avoids a
    # near-empty MXU pass for a contraction of length 2.
    h1 = w1[:, 0:1] * xt[0:1, :] + w1[:, 1:2] * xt[1:2, :] + b1_ref[...]
    h1 = jnp.maximum(h1, 0.0)                          # (HIDDEN, TILE_M)

    # Layer 2: plain (H,H) @ (H,M) MXU matmul, f32 accumulation.
    h2 = jnp.dot(w2_ref[...], h1, preferred_element_type=jnp.float32) + b2_ref[...]
    h2 = jnp.maximum(h2, 0.0)                          # (HIDDEN, TILE_M)

    # Layer 3: plain (1,H) @ (H,M) matmul -> lane-dense (1, TILE_M) output.
    out = jnp.dot(w3_ref[...], h2, preferred_element_type=jnp.float32)
    o_ref[...] = (out + b3_ref[0, 0]).astype(o_ref.dtype)


def mlp_pallas_batched(x, kparams):
    """x: (B, 2) f32 rows of cat([state, action]).  Returns (B,) f32."""
    w1, b1, w2, b2, w3, b3 = kparams
    B = x.shape[0]
    tile_m = _choose_tile_m(B)
    n_tiles = -(-B // tile_m)
    B_pad = n_tiles * tile_m
    if B_pad != B:
        x = jnp.pad(x, ((0, B_pad - B), (0, 0)))
    xt = x.T                                            # (2, B_pad): lane-dense input

    flops = 2 * B_pad * (IN_DIM * HIDDEN + HIDDEN * HIDDEN + HIDDEN)
    weight_bytes = 4 * (w1.size + b1.size + w2.size + b2.size + w3.size + b3.size)

    out = pl.pallas_call(
        mlp_kernel,
        out_shape=jax.ShapeDtypeStruct((1, B_pad), jnp.float32),
        grid=(n_tiles,),
        in_specs=[
            pl.BlockSpec((IN_DIM, tile_m), lambda i: (0, i)),        # x^T tile (lane-dense)
            pl.BlockSpec((HIDDEN, IN_DIM), lambda i: (0, 0)),        # W1  (VMEM-resident)
            pl.BlockSpec((HIDDEN, 1), lambda i: (0, 0)),             # b1
            pl.BlockSpec((HIDDEN, HIDDEN), lambda i: (0, 0)),        # W2
            pl.BlockSpec((HIDDEN, 1), lambda i: (0, 0)),             # b2
            pl.BlockSpec((1, HIDDEN), lambda i: (0, 0)),             # W3 row
            pl.BlockSpec(memory_space=pltpu.MemorySpace.SMEM),       # b3 scalar
        ],
        out_specs=pl.BlockSpec((1, tile_m), lambda i: (0, i)),       # lane-dense output
        compiler_params=pltpu.CompilerParams(
            dimension_semantics=("parallel",),          # even tile count -> both TCs on v7x
        ),
        cost_estimate=pl.CostEstimate(
            flops=flops,
            transcendentals=0,
            bytes_accessed=weight_bytes + 4 * xt.size + 4 * B_pad,
        ),
    )(xt, w1, b1, w2, b2, w3, b3)
    return out[0, :B]


def mlp_pallas(state, action, kparams):
    """Matches the PyTorch forward: state (1,), action (1,) -> (1,).
    (Single-sample calls are launch/DMA-latency bound by nature — the batched
    path above is the one tuned for throughput.)"""
    x = jnp.concatenate([state, action], axis=0).reshape(1, IN_DIM)
    return mlp_pallas_batched(x, kparams)


def init_params(key):
    """PyTorch nn.Linear default init: uniform(-1/sqrt(fan_in), 1/sqrt(fan_in)).
    Weights kept in PyTorch layout (out_features, in_features), unpadded."""
    dims = [(HIDDEN_REAL, 2), (HIDDEN_REAL, HIDDEN_REAL), (1, HIDDEN_REAL)]
    params = []
    for fan_out, fan_in in dims:
        key, kw, kb = jax.random.split(key, 3)
        bound = 1.0 / jnp.sqrt(jnp.float32(fan_in))
        w = jax.random.uniform(kw, (fan_out, fan_in), jnp.float32, -bound, bound)
        b = jax.random.uniform(kb, (fan_out,), jnp.float32, -bound, bound)
        params += [w, b]
    return tuple(params)


def pad_params(params):
    """Zero-pad the hidden dim 200 -> 256 for the kernel (exact through ReLU and
    the zero W3 columns)."""
    w1, b1, w2, b2, w3, b3 = params
    ph = HIDDEN - HIDDEN_REAL
    w1_k = jnp.pad(w1, ((0, ph), (0, 0)))                   # (256, 2)
    b1_k = jnp.pad(b1, ((0, ph),)).reshape(HIDDEN, 1)       # (256, 1)
    w2_k = jnp.pad(w2, ((0, ph), (0, ph)))                  # (256, 256)
    b2_k = jnp.pad(b2, ((0, ph),)).reshape(HIDDEN, 1)       # (256, 1)
    w3_k = jnp.pad(w3, ((0, 0), (0, ph)))                   # (1, 256)
    b3_k = b3.reshape(1, 1)                                 # (1, 1) -> SMEM
    return (w1_k, b1_k, w2_k, b2_k, w3_k, b3_k)


def mlp_ref_batched(x, params):
    """Plain-JAX reference on the unpadded PyTorch-layout params."""
    w1, b1, w2, b2, w3, b3 = params
    h1 = jnp.maximum(x @ w1.T + b1, 0.0)
    h2 = jnp.maximum(h1 @ w2.T + b2, 0.0)
    return (h2 @ w3.T + b3)[:, 0]


if __name__ == "__main__":
    key = jax.random.PRNGKey(0)
    key, ks, ka, kbatch = jax.random.split(key, 4)
    params = init_params(key)
    kparams = pad_params(params)

    # ---- Unbatched: matches the PyTorch module semantics exactly ----
    state = jax.random.normal(ks, (1,), jnp.float32)
    action = jax.random.normal(ka, (1,), jnp.float32)
    out = mlp_pallas(state, action, kparams)
    jax.block_until_ready(out)
    ref = mlp_ref_batched(jnp.concatenate([state, action]).reshape(1, 2), params)
    assert out.shape == (1,)
    assert jnp.allclose(out, ref, atol=1e-4, rtol=1e-4), (out, ref)

    # ---- Batched path (the performance-relevant one): 300 samples ----
    # tile_m = 256 -> 2 tiles (even split across v7x's 2 TCs), lane-dense blocks.
    xb = jax.random.normal(kbatch, (300, 2), jnp.float32)
    outb = mlp_pallas_batched(xb, kparams)
    jax.block_until_ready(outb)
    refb = mlp_ref_batched(xb, params)
    assert outb.shape == (300,)
    assert jnp.allclose(outb, refb, atol=1e-4, rtol=1e-4)

    print("KERNEL_OK")
</pallas_src>

<mosaic_0001>
module attributes {stable_mosaic.version = 11 : i64} {
  func.func @mlp_kernel(%arg0: i32, %arg1: memref<2x128xf32, #tpu.memory_space<vmem>>, %arg2: memref<256x2xf32, #tpu.memory_space<vmem>>, %arg3: memref<256x1xf32, #tpu.memory_space<vmem>>, %arg4: memref<256x256xf32, #tpu.memory_space<vmem>>, %arg5: memref<256x1xf32, #tpu.memory_space<vmem>>, %arg6: memref<1x256xf32, #tpu.memory_space<vmem>>, %arg7: memref<1x1xf32, #tpu.memory_space<smem>>, %arg8: memref<1x128xf32, #tpu.memory_space<vmem>>) attributes {dimension_semantics = [#tpu.dimension_semantics<parallel>], iteration_bounds = array<i64: 1>, scalar_prefetch = 0 : i64, scratch_operands = 0 : i64, tpu.core_type = #tpu.core_type<tc>, window_params = [{transform_indices = @transform_0, window_bounds = array<i64: 2, 128>}, {pipeline_mode = #tpu.pipeline_mode<synchronous>, transform_indices = @transform_1, window_bounds = array<i64: 256, 2>}, {pipeline_mode = #tpu.pipeline_mode<synchronous>, transform_indices = @transform_2, window_bounds = array<i64: 256, 1>}, {pipeline_mode = #tpu.pipeline_mode<synchronous>, transform_indices = @transform_3, window_bounds = array<i64: 256, 256>}, {pipeline_mode = #tpu.pipeline_mode<synchronous>, transform_indices = @transform_4, window_bounds = array<i64: 256, 1>}, {pipeline_mode = #tpu.pipeline_mode<synchronous>, transform_indices = @transform_5, window_bounds = array<i64: 1, 256>}, {transform_indices = @transform_6, window_bounds = array<i64: 1, 1>}, {transform_indices = @transform_7, window_bounds = array<i64: 1, 128>}]} {
    %c0 = arith.constant 0 : index
    %c0_0 = arith.constant 0 : index
    %0 = vector.load %arg1[%c0, %c0_0] : memref<2x128xf32, #tpu.memory_space<vmem>>, vector<2x128xf32>
    %c0_1 = arith.constant 0 : index
    %c0_2 = arith.constant 0 : index
    %1 = vector.load %arg2[%c0_1, %c0_2] : memref<256x2xf32, #tpu.memory_space<vmem>>, vector<256x2xf32>
    %2 = vector.extract_strided_slice %1 {offsets = [0, 0], sizes = [256, 1], strides = [1, 1]} : vector<256x2xf32> to vector<256x1xf32>
    %3 = vector.extract_strided_slice %0 {offsets = [0, 0], sizes = [1, 128], strides = [1, 1]} : vector<2x128xf32> to vector<1x128xf32>
    %4 = vector.broadcast %2 : vector<256x1xf32> to vector<256x128xf32>
    %5 = vector.broadcast %3 : vector<1x128xf32> to vector<256x128xf32>
    %6 = arith.mulf %4, %5 : vector<256x128xf32>
    %7 = vector.extract_strided_slice %1 {offsets = [0, 1], sizes = [256, 1], strides = [1, 1]} : vector<256x2xf32> to vector<256x1xf32>
    %8 = vector.extract_strided_slice %0 {offsets = [1, 0], sizes = [1, 128], strides = [1, 1]} : vector<2x128xf32> to vector<1x128xf32>
    %9 = vector.broadcast %7 : vector<256x1xf32> to vector<256x128xf32>
    %10 = vector.broadcast %8 : vector<1x128xf32> to vector<256x128xf32>
    %11 = arith.mulf %9, %10 : vector<256x128xf32>
    %12 = arith.addf %6, %11 : vector<256x128xf32>
    %c0_3 = arith.constant 0 : index
    %c0_4 = arith.constant 0 : index
    %13 = vector.load %arg3[%c0_3, %c0_4] : memref<256x1xf32, #tpu.memory_space<vmem>>, vector<256x1xf32>
    %14 = vector.broadcast %13 : vector<256x1xf32> to vector<256x128xf32>
    %15 = arith.addf %12, %14 : vector<256x128xf32>
    %cst = arith.constant 0.000000e+00 : f32
    %16 = vector.broadcast %cst : f32 to vector<256x128xf32>
    %17 = arith.maximumf %15, %16 : vector<256x128xf32>
    %c0_5 = arith.constant 0 : index
    %c0_6 = arith.constant 0 : index
    %18 = vector.load %arg4[%c0_5, %c0_6] : memref<256x256xf32, #tpu.memory_space<vmem>>, vector<256x256xf32>
    %cst_7 = arith.constant dense<0.000000e+00> : vector<256x128xf32>
    %19 = tpu.matmul %18, %17, %cst_7 {dimension_numbers = #tpu.dot_dimension_numbers<[1], [0], [0], [1], [0, 0, 1, 1], [], []>} : vector<256x256xf32>, vector<256x128xf32>, vector<256x128xf32> -> vector<256x128xf32>
    %c0_8 = arith.constant 0 : index
    %c0_9 = arith.constant 0 : index
    %20 = vector.load %arg5[%c0_8, %c0_9] : memref<256x1xf32, #tpu.memory_space<vmem>>, vector<256x1xf32>
    %21 = vector.broadcast %20 : vector<256x1xf32> to vector<256x128xf32>
    %22 = arith.addf %19, %21 : vector<256x128xf32>
    %cst_10 = arith.constant 0.000000e+00 : f32
    %23 = vector.broadcast %cst_10 : f32 to vector<256x128xf32>
    %24 = arith.maximumf %22, %23 : vector<256x128xf32>
    %c0_11 = arith.constant 0 : index
    %c0_12 = arith.constant 0 : index
    %25 = vector.load %arg6[%c0_11, %c0_12] : memref<1x256xf32, #tpu.memory_space<vmem>>, vector<1x256xf32>
    %cst_13 = arith.constant dense<0.000000e+00> : vector<1x128xf32>
    %26 = tpu.matmul %25, %24, %cst_13 {dimension_numbers = #tpu.dot_dimension_numbers<[1], [0], [0], [1], [0, 0, 1, 1], [], []>} : vector<1x256xf32>, vector<256x128xf32>, vector<1x128xf32> -> vector<1x128xf32>
    %c0_14 = arith.constant 0 : index
    %c0_15 = arith.constant 0 : index
    %27 = memref.load %arg7[%c0_14, %c0_15] : memref<1x1xf32, #tpu.memory_space<smem>>
    %28 = vector.broadcast %27 : f32 to vector<1x128xf32>
    %29 = arith.addf %26, %28 : vector<1x128xf32>
    %c0_16 = arith.constant 0 : index
    %c0_17 = arith.constant 0 : index
    %30 = vector.load %arg8[%c0_16, %c0_17] : memref<1x128xf32, #tpu.memory_space<vmem>>, vector<1x128xf32>
    tpu.vector_store %arg8[%c0_16, %c0_17], %29 {strides = array<i32>} : memref<1x128xf32, #tpu.memory_space<vmem>>, vector<1x128xf32>,
    return
  }
  func.func @transform_0(%arg0: i32) -> (i32, i32) {
    %c0_i32 = arith.constant 0 : i32
    %c0_i32_0 = arith.constant 0 : i32
    return %c0_i32, %arg0 : i32, i32
  }
  func.func @transform_1(%arg0: i32) -> (i32, i32) {
    %c0_i32 = arith.constant 0 : i32
    %c0_i32_0 = arith.constant 0 : i32
    %c0_i32_1 = arith.constant 0 : i32
    return %c0_i32, %c0_i32_0 : i32, i32
  }
  func.func @transform_2(%arg0: i32) -> (i32, i32) {
    %c0_i32 = arith.constant 0 : i32
    %c0_i32_0 = arith.constant 0 : i32
    %c0_i32_1 = arith.constant 0 : i32
    return %c0_i32, %c0_i32_0 : i32, i32
  }
  func.func @transform_3(%arg0: i32) -> (i32, i32) {
    %c0_i32 = arith.constant 0 : i32
    %c0_i32_0 = arith.constant 0 : i32
    %c0_i32_1 = arith.constant 0 : i32
    return %c0_i32, %c0_i32_0 : i32, i32
  }
  func.func @transform_4(%arg0: i32) -> (i32, i32) {
    %c0_i32 = arith.constant 0 : i32
    %c0_i32_0 = arith.constant 0 : i32
    %c0_i32_1 = arith.constant 0 : i32
    return %c0_i32, %c0_i32_0 : i32, i32
  }
  func.func @transform_5(%arg0: i32) -> (i32, i32) {
    %c0_i32 = arith.constant 0 : i32
    %c0_i32_0 = arith.constant 0 : i32
    %c0_i32_1 = arith.constant 0 : i32
    return %c0_i32, %c0_i32_0 : i32, i32
  }
  func.func @transform_6(%arg0: i32) -> (i32, i32) {
    %c0_i32 = arith.constant 0 : i32
    %c0_i32_0 = arith.constant 0 : i32
    %c0_i32_1 = arith.constant 0 : i32
    return %c0_i32, %c0_i32_0 : i32, i32
  }
  func.func @transform_7(%arg0: i32) -> (i32, i32) {
    %c0_i32 = arith.constant 0 : i32
    %c0_i32_0 = arith.constant 0 : i32
    return %c0_i32, %arg0 : i32, i32
  }
}

</mosaic_0001>

<bundles_post_ra>
// kernel: tpu_custom_call.1
= control target key start
LH: loop header
LB: loop body
LE: loop exit
PB: predicated region body
PF: predicated region fallthrough
CT: control target
= control target key end

     0   :  { %v1530_v2 = vmov 1   ;;  %v1531_v7 = vmov 0   ;;  %s2411_s0 = inlined_call_operand.vmem [shape: f32[2,128], index: 0, kind: input, shape index: {}]   ;;  %s2412_s1 = inlined_call_operand.vmem [shape: f32[256,2], index: 1, kind: input, shape index: {}]   ;;  %s2413_s2 = inlined_call_operand.vmem [shape: f32[256,1], index: 2, kind: input, shape index: {}]   ;;  %s2414_s3 = inlined_call_operand.vmem [shape: f32[256,256], index: 3, kind: input, shape index: {}]   ;;  %s2415_s4 = inlined_call_operand.vmem [shape: f32[256,1], index: 4, kind: input, shape index: {}]   ;;  %s2416_s5 = inlined_call_operand.vmem [shape: f32[1,256], index: 5, kind: input, shape index: {}]   ;;  %s2417_s6 = inlined_call_operand.<no memory space> [shape: f32[1,1], index: 6, kind: input, shape index: {}]   ;;  %s2418_s7 = inlined_call_operand.hbm [shape: f32[1,128], index: 7, kind: output, shape index: {}]  }
   0x1   :  { %v1577_v0 = vld [vmem:[%s2412_s1 + $0x10] sm:$0xff]  ;;  %v1582_v1 = vld [vmem:[%s2412_s1] sm:$0xff]  ;;  %1474 = vset.pattern.permute.xlu0 %v1530_v2  ;;  %1472 = vset.pattern.permute.xlu1 %v1530_v2  ;;  %v30_v4 = vld [vmem:[%s2412_s1 + $0x8] sm:$0xff] }
   0x2   :  { %266 = vperm.xlu0 %1474, %v1577_v0   ;;  %258 = vperm.xlu1 %1472, %v1582_v1   ;;  %v33_v3 = vld [vmem:[%s2412_s1 + $0x20] sm:$0xff]  ;;  %v35_v5 = vld [vmem:[%s2412_s1 + $0x30] sm:$0xff]  ;;  %v32_v6 = vld [vmem:[%s2412_s1 + $0x18] sm:$0xff] }
   0x3   :  { %v37_v8 = vld [vmem:[%s2412_s1 + $0x40] sm:$0xff]  ;;  %v39_v9 = vld [vmem:[%s2412_s1 + $0x50] sm:$0xff] }
   0x6   :  { %274 = vperm.xlu0 %1474, %v33_v3   ;;  %262 = vperm.xlu1 %1472, %v30_v4  }
   0xa   :  { %282 = vperm.xlu0 %1474, %v35_v5   ;;  %1473 = vset.pattern.permute.xlu1 %v1531_v7 }
   0xb   :  { %78 = vperm.xlu1 %1473, %v32_v6  }
   0xe   :  { %290 = vperm.xlu0 %1474, %v37_v8  }
   0xf   :  { %1475 = vset.pattern.permute.xlu1 %v1530_v2 }
  0x10   :  { %13 = vsyncpa [#allocation4], 0  ;;  %270 = vperm.xlu1 %1475, %v32_v6   ;;  %v453_v10 = vld [vmem:[%s2413_s2] sm:$0xff]  ;;  %v1621_v12 = vld [vmem:[%s2412_s1 + $0x70] sm:$0xff]  ;;  %v1532_v31 = vmov 0.0|0.0  }
  0x11   :  { %v1614_v11 = vld [vmem:[%s2412_s1 + $0x60] sm:$0xff]  ;;  %v34_v13 = vld [vmem:[%s2412_s1 + $0x28] sm:$0xff]  ;;  %v1636_v15 = vld [vmem:[%s2412_s1 + $0x90] sm:$0xff]  ;;  %1356 = vmatprep.subr.bf16.mxu0 %v1532_v31  ;;  %1436 = vmatprep.subr.bf16.mxu1 %v1532_v31 }
  0x12   :  { %298 = vperm.xlu0 %1474, %v39_v9   ;;  %v1630_v14 = vld [vmem:[%s2412_s1 + $0x80] sm:$0xff]  ;;  %v455_v17 = vld [vmem:[%s2413_s2 + $0x10] sm:$0xff]  ;;  %v36_v20 = vld [vmem:[%s2412_s1 + $0x38] sm:$0xff] }
  0x13   :  { %v1643_v16 = vld [vmem:[%s2412_s1 + $0xa0] sm:$0xff]  ;;  %v1653_v18 = vld [vmem:[%s2412_s1 + $0xb0] sm:$0xff]  ;;  %v38_v25 = vld [vmem:[%s2412_s1 + $0x48] sm:$0xff] }
  0x14   :  { %1476 = vset.pattern.permute.xlu1 %v1531_v7  ;;  %v1659_v19 = vld [vmem:[%s2412_s1 + $0xc0] sm:$0xff]  ;;  %v1668_v21 = vld [vmem:[%s2412_s1 + $0xd0] sm:$0xff]  ;;  %v454_v26 = vld [vmem:[%s2413_s2 + $0x8] sm:$0xff] }
  0x15   :  { %487 = vperm.xlu1 %1476, %v453_v10   ;;  %v1675_v22 = vld [vmem:[%s2412_s1 + $0xe0] sm:$0xff]  ;;  %v1684_v24 = vld [vmem:[%s2412_s1 + $0xf0] sm:$0xff]  ;;  %v456_v28 = vld [vmem:[%s2413_s2 + $0x18] sm:$0xff] }
  0x16   :  { %306 = vperm.xlu0 %1474, %v1614_v11   ;;  %v457_v23 = vld [vmem:[%s2413_s2 + $0x20] sm:$0xff]  ;;  %v459_v27 = vld [vmem:[%s2413_s2 + $0x30] sm:$0xff]  ;;  %v458_v29 = vld [vmem:[%s2413_s2 + $0x28] sm:$0xff] }
  0x17   :  { %v40_v30 = vld [vmem:[%s2412_s1 + $0x58] sm:$0xff]  ;;  %v462_v33 = vld [vmem:[%s2413_s2 + $0x48] sm:$0xff]  ;;  %v461_v34 = vld [vmem:[%s2413_s2 + $0x40] sm:$0xff] }
  0x18   :  { %v460_v32 = vld [vmem:[%s2413_s2 + $0x38] sm:$0xff]  ;;  %v466_v36 = vld [vmem:[%s2413_s2 + $0x68] sm:$0xff]  ;;  %v463_v40 = vld [vmem:[%s2413_s2 + $0x50] sm:$0xff] }
  0x19   :  { %83 = vperm.xlu1 %1476, %v33_v3   ;;  %v464_v35 = vld [vmem:[%s2413_s2 + $0x58] sm:$0xff]  ;;  %v42_v37 = vld [vmem:[%s2412_s1 + $0x68] sm:$0xff]  ;;  %v465_v47 = vld [vmem:[%s2413_s2 + $0x60] sm:$0xff] }
  0x1a   :  { %314 = vperm.xlu0 %1474, %v1621_v12   ;;  %v468_v38 = vld [vmem:[%s2413_s2 + $0x78] sm:$0xff]  ;;  %v470_v39 = vld [vmem:[%s2413_s2 + $0x88] sm:$0xff]  ;;  %v789_v51 = vld [vmem:[%s2415_s4 + $0x80] sm:$0xff] }
  0x1b   :  { %v472_v41 = vld [vmem:[%s2413_s2 + $0x98] sm:$0xff]  ;;  %v474_v42 = vld [vmem:[%s2413_s2 + $0xa8] sm:$0xff]  ;;  %v773_v55 = vld [vmem:[%s2415_s4] sm:$0xff] }
  0x1c   :  { %v44_v43 = vld [vmem:[%s2412_s1 + $0x78] sm:$0xff]  ;;  %v478_v45 = vld [vmem:[%s2413_s2 + $0xc8] sm:$0xff]  ;;  %v791_v58 = vld [vmem:[%s2415_s4 + $0x90] sm:$0xff] }
  0x1d   :  { %88 = vperm.xlu1 %1476, %v34_v13   ;;  %v476_v44 = vld [vmem:[%s2413_s2 + $0xb8] sm:$0xff]  ;;  %v482_v48 = vld [vmem:[%s2413_s2 + $0xe8] sm:$0xff]  ;;  %v467_v61 = vld [vmem:[%s2413_s2 + $0x70] sm:$0xff] }
  0x1e   :  { %322 = vperm.xlu0 %1474, %v1630_v14   ;;  %v480_v46 = vld [vmem:[%s2413_s2 + $0xd8] sm:$0xff]  ;;  %v46_v54 = vld [vmem:[%s2412_s1 + $0x88] sm:$0xff]  ;;  %v775_v62 = vld [vmem:[%s2415_s4 + $0x10] sm:$0xff] }
  0x1f   :  { %v777_v6 = vld [vmem:[%s2415_s4 + $0x20] sm:$0xff]  ;;  %v795_v10 = vld [vmem:[%s2415_s4 + $0xb0] sm:$0xff] }
  0x21   :  { %1477 = vset.pattern.permute.xlu1 %v1530_v2 }
  0x22   :  { %330 = vperm.xlu0 %1474, %v1636_v15   ;;  %278 = vperm.xlu1 %1477, %v34_v13  }
  0x26   :  { %338 = vperm.xlu0 %1474, %v1643_v16   ;;  %1478 = vset.pattern.permute.xlu1 %v1531_v7 }
  0x27   :  { %497 = vperm.xlu1 %1478, %v455_v17   ;;  %v797_v17 = vld [vmem:[%s2415_s4 + $0xc0] sm:$0xff] }
  0x2a   :  { %346 = vperm.xlu0 %1474, %v1653_v18  }
  0x2b   :  { %93 = vperm.xlu1 %1478, %v35_v5   ;;  %v48_v5 = vld [vmem:[%s2412_s1 + $0x98] sm:$0xff] }
  0x2e   :  { %354 = vperm.xlu0 %1474, %v1659_v19  }
  0x2f   :  { %98 = vperm.xlu1 %1478, %v36_v20  }
  0x32   :  { %362 = vperm.xlu0 %1474, %v1668_v21  }
  0x33   :  { %1479 = vset.pattern.permute.xlu1 %v1530_v2 }
  0x34   :  { %286 = vperm.xlu1 %1479, %v36_v20  }
  0x36   :  { %370 = vperm.xlu0 %1474, %v1675_v22  }
  0x38   :  { %1480 = vset.pattern.permute.xlu1 %v1531_v7 }
  0x39   :  { %507 = vperm.xlu1 %1480, %v457_v23  }
  0x3a   :  { %378 = vperm.xlu0 %1474, %v1684_v24  }
  0x3d   :  { %103 = vperm.xlu1 %1480, %v37_v8  }
  0x3e   :  { %1503 = vset.pattern.permute.xlu0 %v1531_v7 }
  0x3f   :  { %63 = vperm.xlu0 %1503, %v1582_v1   ;;  %v793_v1 = vld [vmem:[%s2415_s4 + $0xa0] sm:$0xff] }
  0x41   :  { %108 = vperm.xlu1 %1480, %v38_v25  }
  0x43   :  { %68 = vperm.xlu0 %1503, %v30_v4  }
  0x45   :  { %1481 = vset.pattern.permute.xlu1 %v1530_v2 }
  0x46   :  { %294 = vperm.xlu1 %1481, %v38_v25   ;;  %v781_v25 = vld [vmem:[%s2415_s4 + $0x40] sm:$0xff] }
  0x47   :  { %73 = vperm.xlu0 %1503, %v1577_v0  }
  0x4a   :  { %1482 = vset.pattern.permute.xlu1 %v1531_v7 }
  0x4b   :  { %492 = vperm.xlu0 %1503, %v454_v26   ;;  %517 = vperm.xlu1 %1482, %v459_v27  }
  0x4f   :  { %502 = vperm.xlu0 %1503, %v456_v28   ;;  %113 = vperm.xlu1 %1482, %v39_v9   ;;  %v50_v28 = vld [vmem:[%s2412_s1 + $0xa8] sm:$0xff] }
  0x53   :  { %512 = vperm.xlu0 %1503, %v458_v29   ;;  %118 = vperm.xlu1 %1482, %v40_v30   ;;  %v799_v29 = vld [vmem:[%s2415_s4 + $0xd0] sm:$0xff] }
  0x57   :  { %522 = vperm.xlu0 %1503, %v460_v32   ;;  %1483 = vset.pattern.permute.xlu1 %v1530_v2 }
  0x58   :  { %302 = vperm.xlu1 %1483, %v40_v30  }
  0x5b   :  { %532 = vperm.xlu0 %1503, %v462_v33  }
  0x5c   :  { %1484 = vset.pattern.permute.xlu1 %v1531_v7 }
  0x5d   :  { %527 = vperm.xlu1 %1484, %v461_v34   ;;  %v221_v34 = vlaneseq }
  0x5f   :  { %542 = vperm.xlu0 %1503, %v464_v35  }
  0x61   :  { %123 = vperm.xlu1 %1484, %v1614_v11  }
  0x63   :  { %552 = vperm.xlu0 %1503, %v466_v36   ;;  %v471_v36 = vld [vmem:[%s2413_s2 + $0x90] sm:$0xff] }
  0x65   :  { %128 = vperm.xlu1 %1484, %v42_v37  }
  0x67   :  { %562 = vperm.xlu0 %1503, %v468_v38  }
  0x69   :  { %1485 = vset.pattern.permute.xlu1 %v1530_v2 }
  0x6a   :  { %310 = vperm.xlu1 %1485, %v42_v37   ;;  %v801_v37 = vld [vmem:[%s2415_s4 + $0xe0] sm:$0xff] }
  0x6b   :  { %572 = vperm.xlu0 %1503, %v470_v39   ;;  %v1890_v39 = vshrl.u32 %v221_v34, 7 }
  0x6e   :  { %1486 = vset.pattern.permute.xlu1 %v1531_v7 }
  0x6f   :  { %537 = vperm.xlu1 %1486, %v463_v40   ;;  %582 = vperm.xlu0 %1503, %v472_v41   ;;  %v785_v41 = vld [vmem:[%s2415_s4 + $0x60] sm:$0xff] }
  0x73   :  { %133 = vperm.xlu1 %1486, %v1621_v12   ;;  %592 = vperm.xlu0 %1503, %v474_v42   ;;  %v779_v12 = vld [vmem:[%s2415_s4 + $0x30] sm:$0xff] }
  0x77   :  { %138 = vperm.xlu1 %1486, %v44_v43   ;;  %602 = vperm.xlu0 %1503, %v476_v44   ;;  %v223_v44 = vsub.s32 0, %v1890_v39 }
  0x7b   :  { %1487 = vset.pattern.permute.xlu1 %v1530_v2  ;;  %612 = vperm.xlu0 %1503, %v478_v45   ;;  %v28_v45 = vld [vmem:[%s2411_s0] sm:$0x3]  ;;  %s1533_s0 = smov [#allocation3]  }
  0x7c   :  { %318 = vperm.xlu1 %1487, %v44_v43   ;;  %v387_v43 = vsub.s32 1, %v1890_v39  ;;  %s1313_s24 = sshll.u32 %s1533_s0, 4  ;;  %s1314_s24 = int_to_ptr.vmem [resolvable:$true] %s1313_s24 }
  0x7d   :  { %s1510_s25 = scalar_lea.vmem %s1314_s24, 32  ;;  %p1511_p1 = scmp.lt.s32.totalorder %s1314_s24, %s1314_s24 }
  0x7f   :  { %622 = vperm.xlu0 %1503, %v480_v46  }
  0x80   :  { %1488 = vset.pattern.permute.xlu1 %v1531_v7 }
  0x81   :  { %547 = vperm.xlu1 %1488, %v465_v47   ;;  %v1772_v49 = vpop.permute.xlu1 %258  ;;  %v1774_v50 = vpop.permute.xlu0 %266  ;;  %v52_v47 = vld [vmem:[%s2412_s1 + $0xb8] sm:$0xff] }
  0x83   :  { %632 = vperm.xlu0 %1503, %v482_v48   ;;  %v803_v48 = vld [vmem:[%s2415_s4 + $0xf0] sm:$0xff] }
  0x85   :  { %143 = vperm.xlu1 %1488, %v1630_v14   ;;  %v1780_v52 = vpop.permute.xlu1 %262  ;;  %v1782_v53 = vpop.permute.xlu0 %274 }
  0x87   :  { %887 = vperm.xlu0 %1503, %v789_v51  }
  0x89   :  { %148 = vperm.xlu1 %1488, %v46_v54   ;;  %v1790_v56 = vpop.permute.xlu0 %282 }
  0x8a   :  { %v1792_v57 = vpop.permute.xlu1 %78 }
  0x8b   :  { %807 = vperm.xlu0 %1503, %v773_v55  }
  0x8d   :  { %1489 = vset.pattern.permute.xlu1 %v1530_v2  ;;  %v1798_v59 = vpop.permute.xlu0 %290 }
  0x8e   :  { %326 = vperm.xlu1 %1489, %v46_v54   ;;  %v1913_v54 = vrot.slane %v28_v45, %v387_v43 }
  0x8f   :  { %v1800_v60 = vpop.permute.xlu1 %270  ;;  %897 = vperm.xlu0 %1503, %v791_v58   ;;  %v787_v58 = vld [vmem:[%s2415_s4 + $0x70] sm:$0xff] }
  0x90   :  { %v393_v34 = vmul.f32 %v1913_v54, %v1782_v53  ;;  %v395_v53 = vmul.f32 %v1913_v54, %v1790_v56 }
  0x91   :  { %v1808_v63 = vpop.permute.xlu0 %298 }
  0x92   :  { %1490 = vset.pattern.permute.xlu1 %v1531_v7 }
  0x93   :  { %557 = vperm.xlu1 %1490, %v467_v61   ;;  %817 = vperm.xlu0 %1503, %v775_v62  }
  0x94   :  { %v1811_v0 = vpop.permute.xlu1 %487 }
  0x95   :  { %v1816_v3 = vpop.permute.xlu0 %306 }
  0x97   :  { %153 = vperm.xlu1 %1490, %v1636_v15   ;;  %907 = vperm.xlu0 %1503, %v793_v1   ;;  %v469_v15 = vld [vmem:[%s2413_s2 + $0x80] sm:$0xff]  ;;  %v389_v1 = vmul.f32 %v1913_v54, %v1772_v49 }
  0x98   :  { %v1819_v4 = vpop.permute.xlu1 %83 }
  0x99   :  { %v1827_v8 = vpop.permute.xlu0 %314 }
  0x9b   :  { %158 = vperm.xlu1 %1490, %v48_v5   ;;  %827 = vperm.xlu0 %1503, %v777_v6  }
  0x9c   :  { %v1829_v9 = vpop.permute.xlu1 %88 }
  0x9d   :  { %v1834_v11 = vpop.permute.xlu0 %322 }
  0x9f   :  { %1491 = vset.pattern.permute.xlu1 %v1530_v2  ;;  %917 = vperm.xlu0 %1503, %v795_v10  }
  0xa0   :  { %334 = vperm.xlu1 %1491, %v48_v5   ;;  %v391_v5 = vmul.f32 %v1913_v54, %v1774_v50 }
  0xa1   :  { %v1840_v13 = vpop.permute.xlu1 %278  ;;  %v1842_v14 = vpop.permute.xlu0 %330 }
  0xa3   :  { %837 = vperm.xlu0 %1503, %v779_v12  }
  0xa4   :  { %1492 = vset.pattern.permute.xlu1 %v1531_v7 }
  0xa5   :  { %567 = vperm.xlu1 %1492, %v469_v15   ;;  %v1851_v20 = vpop.permute.xlu0 %338 }
  0xa6   :  { %v1853_v23 = vpop.permute.xlu1 %497 }
  0xa7   :  { %927 = vperm.xlu0 %1503, %v797_v17   ;;  %v473_v17 = vld [vmem:[%s2413_s2 + $0xa0] sm:$0xff] }
  0xa9   :  { %163 = vperm.xlu1 %1492, %v1643_v16   ;;  %v1859_v26 = vpop.permute.xlu0 %346  ;;  %v783_v16 = vld [vmem:[%s2415_s4 + $0x50] sm:$0xff] }
  0xaa   :  { %v1861_v27 = vpop.permute.xlu1 %93 }
  0xab   :  { %847 = vperm.xlu0 %1503, %v781_v25   ;;  %v390_v25 = vmul.f32 %v1913_v54, %v1780_v52 }
  0xad   :  { %168 = vperm.xlu1 %1492, %v50_v28   ;;  %v1869_v30 = vpop.permute.xlu0 %354 }
  0xae   :  { %v1871_v32 = vpop.permute.xlu1 %98 }
  0xaf   :  { %937 = vperm.xlu0 %1503, %v799_v29  }
  0xb1   :  { %1493 = vset.pattern.permute.xlu1 %v1530_v2  ;;  %v1877_v33 = vpop.permute.xlu0 %362 }
  0xb2   :  { %342 = vperm.xlu1 %1493, %v50_v28   ;;  %v392_v28 = vmul.f32 %v1913_v54, %v1800_v60 }
  0xb3   :  { %v1879_v35 = vpop.permute.xlu1 %286  ;;  %857 = vperm.xlu0 %1503, %v783_v16  }
  0xb5   :  { %v1887_v38 = vpop.permute.xlu0 %370 }
  0xb6   :  { %1494 = vset.pattern.permute.xlu1 %v1531_v7 }
  0xb7   :  { %577 = vperm.xlu1 %1494, %v471_v36   ;;  %947 = vperm.xlu0 %1503, %v801_v37  }
  0xb8   :  { %v508_v40 = vpop.permute.xlu1 %507 }
  0xb9   :  { %v1895_v42 = vpop.permute.xlu0 %378 }
  0xbb   :  { %173 = vperm.xlu1 %1494, %v1653_v18   ;;  %867 = vperm.xlu0 %1503, %v785_v41   ;;  %v1917_v18 = vrot.slane %v28_v45, %v223_v44 }
  0xbc   :  { %v1903_v46 = vpop.permute.xlu1 %103 }
  0xbd   :  { %v228_v36 = vmul.f32 %v1917_v18, %v1792_v57  ;;  %v229_v52 = vmul.f32 %v1917_v18, %v1819_v4  ;;  %v54_v4 = vld [vmem:[%s2412_s1 + $0xc8] sm:$0xff] }
  0xbe   :  { %v64_v51 = vpop.permute.xlu0 %63 }
  0xbf   :  { %178 = vperm.xlu1 %1494, %v52_v47   ;;  %957 = vperm.xlu0 %1503, %v803_v48   ;;  %v225_v61 = vmul.f32 %v1917_v18, %v64_v51  ;;  %v424_v60 = vadd.f32 %v392_v28, %v228_v36  ;;  %v425_v57 = vadd.f32 %v393_v34, %v229_v52 }
  0xc0   :  { %v1919_v55 = vpop.permute.xlu1 %108 }
  0xc1   :  { %v421_v6 = vadd.f32 %v389_v1, %v225_v61  ;;  %v396_v1 = vmul.f32 %v1913_v54, %v1879_v35  ;;  %v649_v56 = vadd.f32 %v508_v40, %v425_v57  ;;  %v234_v36 = vmul.f32 %v1917_v18, %v1919_v55 }
  0xc2   :  { %v69_v62 = vpop.permute.xlu0 %68 }
  0xc3   :  { %1495 = vset.pattern.permute.xlu1 %v1530_v2  ;;  %877 = vperm.xlu0 %1503, %v787_v58   ;;  %v226_v10 = vmul.f32 %v1917_v18, %v69_v62  ;;  %v645_v16 = vadd.f32 %v1811_v0, %v421_v6  ;;  %v681_v40 = vmax.f32 %v649_v56, 0.0 }
  0xc4   :  { %350 = vperm.xlu1 %1495, %v52_v47   ;;  %v394_v47 = vmul.f32 %v1913_v54, %v1840_v13  ;;  %v230_v13 = vmul.f32 %v1917_v18, %v1829_v9 }
  0xc5   :  { %v295_v12 = vpop.permute.xlu1 %294  ;;  %v422_v29 = vadd.f32 %v390_v25, %v226_v10  ;;  %v677_v0 = vmax.f32 %v645_v16, 0.0  ;;  %v233_v16 = vmul.f32 %v1917_v18, %v1903_v46 }
  0xc6   :  { %v74_v15 = vpop.permute.xlu0 %73  ;;  %v426_v10 = vadd.f32 %v394_v47, %v230_v13  ;;  %v398_v28 = vmul.f32 %v1913_v54, %v295_v12 }
  0xc7   :  { %v227_v49 = vmul.f32 %v1917_v18, %v74_v15  ;;  %v232_v15 = vmul.f32 %v1917_v18, %v1871_v32  ;;  %v397_v32 = vmul.f32 %v1913_v54, %v1798_v59  ;;  %v475_v59 = vld [vmem:[%s2413_s2 + $0xb0] sm:$0xff] }
  0xc8   :  { %1496 = vset.pattern.permute.xlu1 %v1531_v7  ;;  %v430_v46 = vadd.f32 %v398_v28, %v234_v36  ;;  %v479_v36 = vld [vmem:[%s2413_s2 + $0xd0] sm:$0xff] }
  0xc9   :  { %v423_v50 = vadd.f32 %v391_v5, %v227_v49  ;;  %587 = vperm.xlu1 %1496, %v473_v17   ;;  %v428_v35 = vadd.f32 %v396_v1, %v232_v15 }
  0xca   :  { %v493_v37 = vpop.permute.xlu0 %492  ;;  %v518_v41 = vpop.permute.xlu1 %517 }
  0xcb   :  { %v646_v45 = vadd.f32 %v493_v37, %v422_v29  ;;  %v647_v48 = vadd.f32 %v1853_v23, %v423_v50  ;;  %v231_v23 = vmul.f32 %v1917_v18, %v1861_v27 }
  0xcd   :  { %v678_v51 = vmax.f32 %v646_v45, 0.0  ;;  %183 = vperm.xlu1 %1496, %v1659_v19   ;;  %v679_v5 = vmax.f32 %v647_v48, 0.0  ;;  %v427_v27 = vadd.f32 %v395_v53, %v231_v23  ;;  %v429_v48 = vadd.f32 %v397_v32, %v233_v16 }
  0xce   :  { %v503_v58 = vpop.permute.xlu0 %502  ;;  %v1953_v61 = vpop.permute.xlu1 %113 }
  0xcf   :  { %v648_v62 = vadd.f32 %v503_v58, %v424_v60  ;;  %v1357_v19 = vpack.c.bf16 %v678_v51, %v677_v0  ;;  %v651_v50 = vadd.f32 %v518_v41, %v427_v27 }
  0xd1   :  { %v680_v6 = vmax.f32 %v648_v62, 0.0  ;;  %188 = vperm.xlu1 %1496, %v54_v4   ;;  %1358 = vmatpush1.bf16.msra.mxu0 %v1357_v19  ;;  %v683_v41 = vmax.f32 %v651_v50, 0.0 }
  0xd2   :  { %1452 = vmatpush1.bf16.msra.mxu1 %v1357_v19  ;;  %v513_v17 = vpop.permute.xlu0 %512  ;;  %v119_v9 = vpop.permute.xlu1 %118  ;;  %1359 = vmatprep.subr.bf16.mxu0 %v1532_v31  ;;  %v235_v19 = vmul.f32 %v1917_v18, %v1953_v61 }
  0xd3   :  { %v1360_v25 = vpack.c.bf16 %v680_v6, %v679_v5  ;;  %v650_v49 = vadd.f32 %v513_v17, %v426_v10  ;;  %1437 = vmatprep.subr.bf16.mxu1 %v1532_v31  ;;  %v236_v1 = vmul.f32 %v1917_v18, %v119_v9  ;;  %v477_v6 = vld [vmem:[%s2413_s2 + $0xc0] sm:$0xff]  ;;  %v58_v9 = vld [vmem:[%s2412_s1 + $0xe8] sm:$0xff] }
  0xd5   :  { %v682_v29 = vmax.f32 %v650_v49, 0.0  ;;  %1497 = vset.pattern.permute.xlu1 %v1530_v2  ;;  %1361 = vmatpush1.bf16.msra.mxu0 %v1360_v25 }
  0xd6   :  { %1453 = vmatpush1.bf16.msra.mxu1 %v1360_v25  ;;  %v523_v34 = vpop.permute.xlu0 %522  ;;  %358 = vperm.xlu1 %1497, %v54_v4   ;;  %v56_v4 = vld [vmem:[%s2412_s1 + $0xd8] sm:$0xff] }
  0xd7   :  { %v1363_v52 = vpack.c.bf16 %v682_v29, %v681_v40  ;;  %v652_v37 = vadd.f32 %v523_v34, %v428_v35  ;;  %v303_v12 = vpop.permute.xlu1 %302  ;;  %1362 = vmatprep.subr.bf16.mxu0 %v1532_v31  ;;  %1438 = vmatprep.subr.bf16.mxu1 %v1532_v31 }
  0xd8   :  { %v400_v62 = vmul.f32 %v1913_v54, %v303_v12 }
  0xd9   :  { %v684_v45 = vmax.f32 %v652_v37, 0.0  ;;  %1364 = vmatpush1.bf16.msra.mxu0 %v1363_v52 }
  0xda   :  { %1454 = vmatpush1.bf16.msra.mxu1 %v1363_v52  ;;  %v533_v60 = vpop.permute.xlu0 %532  ;;  %1498 = vset.pattern.permute.xlu1 %v1531_v7  ;;  %v432_v10 = vadd.f32 %v400_v62, %v236_v1  ;;  %v484_v1 = vld [vmem:[%s2413_s2 + $0xf8] sm:$0xff] }
  0xdb   :  { %v1366_v55 = vpack.c.bf16 %v684_v45, %v683_v41  ;;  %v654_v47 = vadd.f32 %v533_v60, %v430_v46  ;;  %597 = vperm.xlu1 %1498, %v475_v59   ;;  %1365 = vmatprep.subr.bf16.mxu0 %v1532_v31  ;;  %v60_v46 = vld [vmem:[%s2412_s1 + $0xf8] sm:$0xff] }
  0xdc   :  { %v528_v51 = vpop.permute.xlu1 %527  ;;  %1439 = vmatprep.subr.bf16.mxu1 %v1532_v31 }
  0xdd   :  { %v653_v0 = vadd.f32 %v528_v51, %v429_v48  ;;  %1367 = vmatpush1.bf16.msra.mxu0 %v1366_v55  ;;  %v686_v53 = vmax.f32 %v654_v47, 0.0 }
  0xde   :  { %1455 = vmatpush1.bf16.msra.mxu1 %v1366_v55  ;;  %1368 = vmatprep.subr.bf16.mxu0 %v1532_v31  ;;  %v543_v5 = vpop.permute.xlu0 %542 }
  0xdf   :  { %v685_v57 = vmax.f32 %v653_v0, 0.0  ;;  %193 = vperm.xlu1 %1498, %v1668_v21   ;;  %1440 = vmatprep.subr.bf16.mxu1 %v1532_v31  ;;  %v399_v21 = vmul.f32 %v1913_v54, %v1808_v63  ;;  %v656_v15 = vadd.f32 %v543_v5, %v432_v10  ;;  %v790_v5 = vld [vmem:[%s2415_s4 + $0x88] sm:$0xff] }
  0xe0   :  { %v124_v58 = vpop.permute.xlu1 %123 }
  0xe1   :  { %v1369_v13 = vpack.c.bf16 %v686_v53, %v685_v57  ;;  %v431_v17 = vadd.f32 %v399_v21, %v235_v19  ;;  %v688_v63 = vmax.f32 %v656_v15, 0.0  ;;  %v237_v29 = vmul.f32 %v1917_v18, %v124_v58  ;;  %v481_v57 = vld [vmem:[%s2413_s2 + $0xe0] sm:$0xff]  ;;  %v774_v15 = vld [vmem:[%s2415_s4 + $0x8] sm:$0xff] }
  0xe2   :  { %v553_v34 = vpop.permute.xlu0 %552 }
  0xe3   :  { %198 = vperm.xlu1 %1498, %v56_v4   ;;  %1370 = vmatpush1.bf16.msra.mxu0 %v1369_v13 }
  0xe4   :  { %1456 = vmatpush1.bf16.msra.mxu1 %v1369_v13  ;;  %v129_v23 = vpop.permute.xlu1 %128  ;;  %1371 = vmatprep.subr.bf16.mxu0 %v1532_v31 }
  0xe5   :  { %1441 = vmatprep.subr.bf16.mxu1 %v1532_v31  ;;  %v238_v50 = vmul.f32 %v1917_v18, %v129_v23 }
  0xe6   :  { %v563_v58 = vpop.permute.xlu0 %562 }
  0xe7   :  { %1499 = vset.pattern.permute.xlu1 %v1530_v2 }
  0xe8   :  { %366 = vperm.xlu1 %1499, %v56_v4  }
  0xe9   :  { %v311_v56 = vpop.permute.xlu1 %310 }
  0xea   :  { %v402_v28 = vmul.f32 %v1913_v54, %v311_v56 }
  0xec   :  { %1500 = vset.pattern.permute.xlu1 %v1531_v7  ;;  %v434_v32 = vadd.f32 %v402_v28, %v238_v50 }
  0xed   :  { %607 = vperm.xlu1 %1500, %v477_v6  }
  0xee   :  { %v538_v27 = vpop.permute.xlu1 %537  ;;  %v658_v52 = vadd.f32 %v553_v34, %v434_v32 }
  0xef   :  { %v655_v25 = vadd.f32 %v538_v27, %v431_v17  ;;  %v405_v17 = vmul.f32 %v1913_v54, %v1834_v11 }
  0xf0   :  { %v690_v41 = vmax.f32 %v658_v52, 0.0 }
  0xf1   :  { %v687_v49 = vmax.f32 %v655_v25, 0.0  ;;  %203 = vperm.xlu1 %1500, %v1675_v22   ;;  %v401_v22 = vmul.f32 %v1913_v54, %v1816_v3 }
  0xf2   :  { %v134_v61 = vpop.permute.xlu1 %133 }
  0xf3   :  { %v1372_v35 = vpack.c.bf16 %v688_v63, %v687_v49  ;;  %v433_v37 = vadd.f32 %v401_v22, %v237_v29  ;;  %v239_v51 = vmul.f32 %v1917_v18, %v134_v61  ;;  %v710_v49 = vld [vmem:[%s2414_s3 + $0x8] sm:$0xff]  ;;  %v744_v61 = vld [vmem:[%s2414_s3 + $0x118] sm:$0xff] }
  0xf4   :  { %1029 = vmatprep.mubr.f32.mxu0 %v710_v49  ;;  %1114 = vmatprep.mubr.f32.mxu1 %v744_v61  ;;  %v776_v22 = vld [vmem:[%s2415_s4 + $0x18] sm:$0xff] }
  0xf5   :  { %208 = vperm.xlu1 %1500, %v58_v9   ;;  %1373 = vmatpush1.bf16.msra.mxu0 %v1372_v35 }
  0xf6   :  { %1457 = vmatpush1.bf16.msra.mxu1 %v1372_v35  ;;  %v139_v40 = vpop.permute.xlu1 %138  ;;  %1374 = vmatprep.subr.bf16.mxu0 %v1532_v31  ;;  %v792_v35 = vld [vmem:[%s2415_s4 + $0x98] sm:$0xff] }
  0xf7   :  { %1442 = vmatprep.subr.bf16.mxu1 %v1532_v31  ;;  %v240_v48 = vmul.f32 %v1917_v18, %v139_v40 }
  0xf9   :  { %1501 = vset.pattern.permute.xlu1 %v1530_v2 }
  0xfa   :  { %374 = vperm.xlu1 %1501, %v58_v9   ;;  %v573_v9 = vpop.permute.xlu0 %572 }
  0xfb   :  { %v319_v16 = vpop.permute.xlu1 %318 }
  0xfc   :  { %v404_v47 = vmul.f32 %v1913_v54, %v319_v16 }
  0xfe   :  { %1502 = vset.pattern.permute.xlu1 %v1531_v7  ;;  %v436_v0 = vadd.f32 %v404_v47, %v240_v48 }
  0xff   :  { %617 = vperm.xlu1 %1502, %v479_v36   ;;  %v794_v36 = vld [vmem:[%s2415_s4 + $0xa8] sm:$0xff] }
 0x100   :  { %v548_v12 = vpop.permute.xlu1 %547  ;;  %v660_v13 = vadd.f32 %v563_v58, %v436_v0 }
 0x101   :  { %v657_v59 = vadd.f32 %v548_v12, %v433_v37  ;;  %v778_v12 = vld [vmem:[%s2415_s4 + $0x28] sm:$0xff] }
 0x102   :  { %v692_v21 = vmax.f32 %v660_v13, 0.0 }
 0x103   :  { %v689_v45 = vmax.f32 %v657_v59, 0.0  ;;  %213 = vperm.xlu1 %1502, %v1684_v24   ;;  %v403_v24 = vmul.f32 %v1913_v54, %v1827_v8 }
 0x104   :  { %v144_v3 = vpop.permute.xlu1 %143 }
 0x105   :  { %v1375_v60 = vpack.c.bf16 %v690_v41, %v689_v45  ;;  %v435_v4 = vadd.f32 %v403_v24, %v239_v51  ;;  %v241_v27 = vmul.f32 %v1917_v18, %v144_v3  ;;  %v780_v51 = vld [vmem:[%s2415_s4 + $0x38] sm:$0xff] }
 0x107   :  { %218 = vperm.xlu1 %1502, %v60_v46   ;;  %1376 = vmatpush1.bf16.msra.mxu0 %v1375_v60  ;;  %v437_v40 = vadd.f32 %v405_v17, %v241_v27  ;;  %v802_v27 = vld [vmem:[%s2415_s4 + $0xe8] sm:$0xff] }
 0x108   :  { %1458 = vmatpush1.bf16.msra.mxu1 %v1375_v60  ;;  %v149_v55 = vpop.permute.xlu1 %148  ;;  %1377 = vmatprep.subr.bf16.mxu0 %v1532_v31  ;;  %v407_v60 = vmul.f32 %v1913_v54, %v1842_v14 }
 0x109   :  { %1443 = vmatprep.subr.bf16.mxu1 %v1532_v31  ;;  %v242_v10 = vmul.f32 %v1917_v18, %v149_v55  ;;  %v583_v55 = vpop.permute.xlu0 %582 }
 0x10b   :  { %1504 = vset.pattern.permute.xlu1 %v1530_v2  ;;  %v483_v2 = vld [vmem:[%s2413_s2 + $0xf0] sm:$0xff]  ;;  %s1506_s2 = scalar_lea.vmem %s1314_s24, 16 }
 0x10c   :  { %382 = vperm.xlu1 %1504, %v60_v46   ;;  %v796_v46 = vld [vmem:[%s2415_s4 + $0xb8] sm:$0xff]  ;;  %p1507_p0 = scmp.ne.s32.totalorder %s1314_s24, %s1506_s2  ;;  %p1512_p2 = scmp.lt.s32.totalorder %s1510_s25, %s1506_s2 }
 0x10d   :  { %v327_v53 = vpop.permute.xlu1 %326 }
 0x10e   :  { %v406_v6 = vmul.f32 %v1913_v54, %v327_v53  ;;  %p1513_p3 = por %p1512_p2, %p1511_p1 }
 0x110   :  { %1505 = vset.pattern.permute.xlu1 %v1531_v7  ;;  %v438_v25 = vadd.f32 %v406_v6, %v242_v10  ;;  %p1514_p4 = pnand %p1513_p3, %p1507_p0 }
 0x111   :  { %627 = vperm.xlu1 %1505, %v481_v57  }
 0x112   :  { %v558_v23 = vpop.permute.xlu1 %557  ;;  %v662_v11 = vadd.f32 %v573_v9, %v438_v25 }
 0x113   :  { %v659_v8 = vadd.f32 %v558_v23, %v435_v4  ;;  %v798_v4 = vld [vmem:[%s2415_s4 + $0xc8] sm:$0xff] }
 0x114   :  { %v694_v32 = vmax.f32 %v662_v11, 0.0  ;;  %v782_v23 = vld [vmem:[%s2415_s4 + $0x48] sm:$0xff]  ;;  %v804_v11 = vld [vmem:[%s2415_s4 + $0xf8] sm:$0xff] }
 0x115   :  { %v691_v62 = vmax.f32 %v659_v8, 0.0  ;;  %637 = vperm.xlu1 %1505, %v483_v2  }
 0x116   :  { %v154_v19 = vpop.permute.xlu1 %153 }
 0x117   :  { %v1378_v56 = vpack.c.bf16 %v692_v21, %v691_v62  ;;  %v243_v41 = vmul.f32 %v1917_v18, %v154_v19  ;;  %v800_v62 = vld [vmem:[%s2415_s4 + $0xd8] sm:$0xff] }
 0x119   :  { %642 = vperm.xlu1 %1505, %v484_v1   ;;  %1379 = vmatpush1.bf16.msra.mxu0 %v1378_v56  ;;  %v439_v48 = vadd.f32 %v407_v60, %v243_v41 }
 0x11a   :  { %1459 = vmatpush1.bf16.msra.mxu1 %v1378_v56  ;;  %v159_v7 = vpop.permute.xlu1 %158  ;;  %1380 = vmatprep.subr.bf16.mxu0 %v1532_v31  ;;  %v409_v56 = vmul.f32 %v1913_v54, %v1851_v20  ;;  %v786_v20 = vld [vmem:[%s2415_s4 + $0x68] sm:$0xff] }
 0x11b   :  { %1444 = vmatprep.subr.bf16.mxu1 %v1532_v31  ;;  %v244_v59 = vmul.f32 %v1917_v18, %v159_v7  ;;  %v593_v7 = vpop.permute.xlu0 %592 }
 0x11d   :  { %892 = vperm.xlu1 %1505, %v790_v5   ;;  %v784_v5 = vld [vmem:[%s2415_s4 + $0x58] sm:$0xff] }
 0x11f   :  { %v335_v63 = vpop.permute.xlu1 %334 }
 0x120   :  { %v408_v37 = vmul.f32 %v1913_v54, %v335_v63 }
 0x121   :  { %812 = vperm.xlu1 %1505, %v774_v15  }
 0x122   :  { %v440_v45 = vadd.f32 %v408_v37, %v244_v59 }
 0x124   :  { %v568_v28 = vpop.permute.xlu1 %567  ;;  %v664_v47 = vadd.f32 %v583_v55, %v440_v45 }
 0x125   :  { %v661_v50 = vadd.f32 %v568_v28, %v437_v40  ;;  %902 = vperm.xlu1 %1505, %v792_v35  }
 0x126   :  { %v696_v57 = vmax.f32 %v664_v47, 0.0 }
 0x127   :  { %v693_v29 = vmax.f32 %v661_v50, 0.0 }
 0x128   :  { %v164_v16 = vpop.permute.xlu1 %163 }
 0x129   :  { %v1381_v34 = vpack.c.bf16 %v694_v32, %v693_v29  ;;  %822 = vperm.xlu1 %1505, %v776_v22   ;;  %v245_v21 = vmul.f32 %v1917_v18, %v164_v16  ;;  %v788_v29 = vld [vmem:[%s2415_s4 + $0x78] sm:$0xff]  ;;  %v411_v32 = vmul.f32 %v1913_v54, %v1859_v26  ;;  %v603_v16 = vpop.permute.xlu0 %602 }
 0x12b   :  { %1382 = vmatpush1.bf16.msra.mxu0 %v1381_v34  ;;  %1460 = vmatpush1.bf16.msra.mxu1 %v1381_v34  ;;  %v441_v10 = vadd.f32 %v409_v56, %v245_v21 }
 0x12c   :  { %v169_v52 = vpop.permute.xlu1 %168  ;;  %1383 = vmatprep.subr.bf16.mxu0 %v1532_v31  ;;  %1445 = vmatprep.subr.bf16.mxu1 %v1532_v31 }
 0x12d   :  { %912 = vperm.xlu1 %1505, %v794_v36   ;;  %v246_v8 = vmul.f32 %v1917_v18, %v169_v52 }
 0x131   :  { %832 = vperm.xlu1 %1505, %v778_v12   ;;  %v343_v3 = vpop.permute.xlu1 %342 }
 0x132   :  { %v410_v2 = vmul.f32 %v1913_v54, %v343_v3 }
 0x134   :  { %v442_v19 = vadd.f32 %v410_v2, %v246_v8 }
 0x135   :  { %922 = vperm.xlu1 %1505, %v796_v46  }
 0x136   :  { %v578_v24 = vpop.permute.xlu1 %577  ;;  %v666_v6 = vadd.f32 %v593_v7, %v442_v19  ;;  %v415_v19 = vmul.f32 %v1913_v54, %v1877_v33 }
 0x137   :  { %v663_v0 = vadd.f32 %v578_v24, %v439_v48  ;;  %v413_v48 = vmul.f32 %v1913_v54, %v1869_v30  ;;  %v613_v24 = vpop.permute.xlu0 %612 }
 0x138   :  { %v698_v63 = vmax.f32 %v666_v6, 0.0 }
 0x139   :  { %v695_v53 = vmax.f32 %v663_v0, 0.0  ;;  %842 = vperm.xlu1 %1505, %v780_v51  }
 0x13a   :  { %v174_v58 = vpop.permute.xlu1 %173 }
 0x13b   :  { %v1384_v13 = vpack.c.bf16 %v696_v57, %v695_v53  ;;  %v247_v28 = vmul.f32 %v1917_v18, %v174_v58 }
 0x13d   :  { %932 = vperm.xlu1 %1505, %v798_v4   ;;  %1385 = vmatpush1.bf16.msra.mxu0 %v1384_v13  ;;  %v443_v36 = vadd.f32 %v411_v32, %v247_v28 }
 0x13e   :  { %1461 = vmatpush1.bf16.msra.mxu1 %v1384_v13  ;;  %v179_v14 = vpop.permute.xlu1 %178  ;;  %1386 = vmatprep.subr.bf16.mxu0 %v1532_v31 }
 0x13f   :  { %1446 = vmatprep.subr.bf16.mxu1 %v1532_v31  ;;  %v248_v40 = vmul.f32 %v1917_v18, %v179_v14 }
 0x141   :  { %852 = vperm.xlu1 %1505, %v782_v23  }
 0x143   :  { %v351_v1 = vpop.permute.xlu1 %350 }
 0x144   :  { %v412_v35 = vmul.f32 %v1913_v54, %v351_v1  ;;  %v623_v1 = vpop.permute.xlu0 %622 }
 0x145   :  { %942 = vperm.xlu1 %1505, %v800_v62  }
 0x146   :  { %v444_v50 = vadd.f32 %v412_v35, %v248_v40 }
 0x148   :  { %v588_v15 = vpop.permute.xlu1 %587  ;;  %v668_v34 = vadd.f32 %v603_v16, %v444_v50  ;;  %v633_v35 = vpop.permute.xlu0 %632 }
 0x149   :  { %v665_v17 = vadd.f32 %v588_v15, %v441_v10  ;;  %862 = vperm.xlu1 %1505, %v784_v5  }
 0x14a   :  { %v700_v59 = vmax.f32 %v668_v34, 0.0 }
 0x14b   :  { %v697_v25 = vmax.f32 %v665_v17, 0.0 }
 0x14c   :  { %v184_v49 = vpop.permute.xlu1 %183 }
 0x14d   :  { %v1387_v61 = vpack.c.bf16 %v698_v63, %v697_v25  ;;  %952 = vperm.xlu1 %1505, %v802_v27   ;;  %v249_v60 = vmul.f32 %v1917_v18, %v184_v49 }
 0x14f   :  { %1388 = vmatpush1.bf16.msra.mxu0 %v1387_v61  ;;  %1462 = vmatpush1.bf16.msra.mxu1 %v1387_v61  ;;  %v445_v0 = vadd.f32 %v413_v48, %v249_v60  ;;  %v711_v60 = vld [vmem:[%s2414_s3 + $0x10] sm:$0xff]  ;;  %v748_v48 = vld [vmem:[%s2414_s3 + $0x138] sm:$0xff] }
 0x150   :  { %v189_v9 = vpop.permute.xlu1 %188  ;;  %1389 = vmatprep.subr.bf16.mxu0 %v1532_v31  ;;  %1447 = vmatprep.subr.bf16.mxu1 %v1532_v31 }
 0x151   :  { %872 = vperm.xlu1 %1505, %v786_v20   ;;  %v250_v26 = vmul.f32 %v1917_v18, %v189_v9  ;;  %v417_v9 = vmul.f32 %v1913_v54, %v1887_v38 }
 0x155   :  { %962 = vperm.xlu1 %1505, %v804_v11   ;;  %v359_v22 = vpop.permute.xlu1 %358 }
 0x156   :  { %v414_v46 = vmul.f32 %v1913_v54, %v359_v22 }
 0x158   :  { %v446_v55 = vadd.f32 %v414_v46, %v250_v26  ;;  %v743_v46 = vld [vmem:[%s2414_s3 + $0x110] sm:$0xff]  ;;  %v712_v26 = vld [vmem:[%s2414_s3 + $0x18] sm:$0xff] }
 0x159   :  { %882 = vperm.xlu1 %1505, %v788_v29   ;;  %v419_v29 = vmul.f32 %v1913_v54, %v1895_v42 }
 0x15a   :  { %v598_v52 = vpop.permute.xlu1 %597  ;;  %v670_v51 = vadd.f32 %v613_v24, %v446_v55  ;;  %v745_v55 = vld [vmem:[%s2414_s3 + $0x120] sm:$0xff] }
 0x15b   :  { %v667_v37 = vadd.f32 %v598_v52, %v443_v36  ;;  %v713_v24 = vld [vmem:[%s2414_s3 + $0x20] sm:$0xff] }
 0x15c   :  { %v702_v4 = vmax.f32 %v670_v51, 0.0  ;;  %v747_v51 = vld [vmem:[%s2414_s3 + $0x130] sm:$0xff] }
 0x15d   :  { %v699_v12 = vmax.f32 %v667_v37, 0.0 }
 0x15e   :  { %v194_v41 = vpop.permute.xlu1 %193 }
 0x15f   :  { %v1390_v45 = vpack.c.bf16 %v700_v59, %v699_v12  ;;  %v251_v8 = vmul.f32 %v1917_v18, %v194_v41 }
 0x161   :  { %1391 = vmatpush1.bf16.msra.mxu0 %v1390_v45  ;;  %1463 = vmatpush1.bf16.msra.mxu1 %v1390_v45  ;;  %v447_v7 = vadd.f32 %v415_v19, %v251_v8  ;;  %v719_v8 = vld [vmem:[%s2414_s3 + $0x50] sm:$0xff]  ;;  %v756_v19 = vld [vmem:[%s2414_s3 + $0x178] sm:$0xff] }
 0x162   :  { %v199_v3 = vpop.permute.xlu1 %198  ;;  %1392 = vmatprep.subr.bf16.mxu0 %v1532_v31  ;;  %1448 = vmatprep.subr.bf16.mxu1 %v1532_v31 }
 0x163   :  { %v252_v30 = vmul.f32 %v1917_v18, %v199_v3 }
 0x167   :  { %v367_v47 = vpop.permute.xlu1 %366 }
 0x168   :  { %v416_v2 = vmul.f32 %v1913_v54, %v367_v47  ;;  %v714_v47 = vld [vmem:[%s2414_s3 + $0x28] sm:$0xff] }
 0x16a   :  { %v448_v62 = vadd.f32 %v416_v2, %v252_v30  ;;  %v720_v2 = vld [vmem:[%s2414_s3 + $0x58] sm:$0xff]  ;;  %v754_v30 = vld [vmem:[%s2414_s3 + $0x168] sm:$0xff] }
 0x16c   :  { %v608_v53 = vpop.permute.xlu1 %607  ;;  %v672_v56 = vadd.f32 %v623_v1, %v448_v62  ;;  %v753_v62 = vld [vmem:[%s2414_s3 + $0x160] sm:$0xff] }
 0x16d   :  { %v669_v57 = vadd.f32 %v608_v53, %v445_v0  ;;  %v716_v0 = vld [vmem:[%s2414_s3 + $0x38] sm:$0xff]  ;;  %v750_v53 = vld [vmem:[%s2414_s3 + $0x148] sm:$0xff]  ;;  %v721_v1 = vld [vmem:[%s2414_s3 + $0x60] sm:$0xff] }
 0x16e   :  { %v704_v15 = vmax.f32 %v672_v56, 0.0  ;;  %v755_v56 = vld [vmem:[%s2414_s3 + $0x170] sm:$0xff] }
 0x16f   :  { %v701_v58 = vmax.f32 %v669_v57, 0.0  ;;  %v715_v57 = vld [vmem:[%s2414_s3 + $0x30] sm:$0xff] }
 0x170   :  { %v204_v13 = vpop.permute.xlu1 %203 }
 0x171   :  { %v1393_v14 = vpack.c.bf16 %v702_v4, %v701_v58  ;;  %v253_v49 = vmul.f32 %v1917_v18, %v204_v13  ;;  %v749_v58 = vld [vmem:[%s2414_s3 + $0x140] sm:$0xff]  ;;  %v718_v4 = vld [vmem:[%s2414_s3 + $0x48] sm:$0xff]  ;;  %v752_v13 = vld [vmem:[%s2414_s3 + $0x158] sm:$0xff] }
 0x173   :  { %1394 = vmatpush1.bf16.msra.mxu0 %v1393_v14  ;;  %1464 = vmatpush1.bf16.msra.mxu1 %v1393_v14  ;;  %v449_v40 = vadd.f32 %v417_v9, %v253_v49  ;;  %v717_v14 = vld [vmem:[%s2414_s3 + $0x40] sm:$0xff]  ;;  %v727_v49 = vld [vmem:[%s2414_s3 + $0x90] sm:$0xff]  ;;  %v764_v9 = vld [vmem:[%s2414_s3 + $0x1b8] sm:$0xff] }
 0x174   :  { %v209_v23 = vpop.permute.xlu1 %208  ;;  %1395 = vmatprep.subr.bf16.mxu0 %v1532_v31  ;;  %1449 = vmatprep.subr.bf16.mxu1 %v1532_v31 }
 0x175   :  { %v254_v33 = vmul.f32 %v1917_v18, %v209_v23  ;;  %v751_v23 = vld [vmem:[%s2414_s3 + $0x150] sm:$0xff] }
 0x179   :  { %v375_v21 = vpop.permute.xlu1 %374 }
 0x17a   :  { %v418_v63 = vmul.f32 %v1913_v54, %v375_v21  ;;  %v722_v21 = vld [vmem:[%s2414_s3 + $0x68] sm:$0xff] }
 0x17c   :  { %v450_v61 = vadd.f32 %v418_v63, %v254_v33  ;;  %v728_v63 = vld [vmem:[%s2414_s3 + $0x98] sm:$0xff]  ;;  %v762_v33 = vld [vmem:[%s2414_s3 + $0x1a8] sm:$0xff] }
 0x17e   :  { %v618_v5 = vpop.permute.xlu1 %617  ;;  %v674_v11 = vadd.f32 %v633_v35, %v450_v61  ;;  %v761_v61 = vld [vmem:[%s2414_s3 + $0x1a0] sm:$0xff] }
 0x17f   :  { %v671_v6 = vadd.f32 %v618_v5, %v447_v7  ;;  %v724_v7 = vld [vmem:[%s2414_s3 + $0x78] sm:$0xff]  ;;  %v758_v5 = vld [vmem:[%s2414_s3 + $0x188] sm:$0xff]  ;;  %v729_v35 = vld [vmem:[%s2414_s3 + $0xa0] sm:$0xff] }
 0x180   :  { %v706_v34 = vmax.f32 %v674_v11, 0.0  ;;  %v763_v11 = vld [vmem:[%s2414_s3 + $0x1b0] sm:$0xff] }
 0x181   :  { %v703_v10 = vmax.f32 %v671_v6, 0.0  ;;  %v723_v6 = vld [vmem:[%s2414_s3 + $0x70] sm:$0xff] }
 0x182   :  { %v214_v17 = vpop.permute.xlu1 %213 }
 0x183   :  { %v1396_v27 = vpack.c.bf16 %v704_v15, %v703_v10  ;;  %v255_v50 = vmul.f32 %v1917_v18, %v214_v17  ;;  %v757_v10 = vld [vmem:[%s2414_s3 + $0x180] sm:$0xff]  ;;  %v726_v15 = vld [vmem:[%s2414_s3 + $0x88] sm:$0xff]  ;;  %v760_v17 = vld [vmem:[%s2414_s3 + $0x198] sm:$0xff] }
 0x185   :  { %1397 = vmatpush1.bf16.msra.mxu0 %v1396_v27  ;;  %1465 = vmatpush1.bf16.msra.mxu1 %v1396_v27  ;;  %v451_v12 = vadd.f32 %v419_v29, %v255_v50  ;;  %v725_v27 = vld [vmem:[%s2414_s3 + $0x80] sm:$0xff]  ;;  %v731_v50 = vld [vmem:[%s2414_s3 + $0xb0] sm:$0xff]  ;;  %v734_v29 = vld [vmem:[%s2414_s3 + $0xc8] sm:$0xff] }
 0x186   :  { %v219_v25 = vpop.permute.xlu1 %218  ;;  %1398 = vmatprep.subr.bf16.mxu0 %v1532_v31  ;;  %1450 = vmatprep.subr.bf16.mxu1 %v1532_v31 }
 0x187   :  { %v256_v52 = vmul.f32 %v1917_v18, %v219_v25  ;;  %v709_v18 = vld [vmem:[%s2414_s3] sm:$0xff]  ;;  %v759_v25 = vld [vmem:[%s2414_s3 + $0x190] sm:$0xff] }
 0x18b   :  { %v383_v20 = vpop.permute.xlu1 %382 }
 0x18c   :  { %v420_v32 = vmul.f32 %v1913_v54, %v383_v20  ;;  %v730_v20 = vld [vmem:[%s2414_s3 + $0xa8] sm:$0xff] }
 0x18e   :  { %v452_v59 = vadd.f32 %v420_v32, %v256_v52  ;;  %v768_v32 = vld [vmem:[%s2414_s3 + $0x1d8] sm:$0xff]  ;;  %v770_v52 = vld [vmem:[%s2414_s3 + $0x1e8] sm:$0xff] }
 0x190   :  { %v628_v28 = vpop.permute.xlu1 %627 }
 0x191   :  { %v673_v22 = vadd.f32 %v628_v28, %v449_v40  ;;  %v732_v40 = vld [vmem:[%s2414_s3 + $0xb8] sm:$0xff]  ;;  %v766_v28 = vld [vmem:[%s2414_s3 + $0x1c8] sm:$0xff] }
 0x193   :  { %v705_v16 = vmax.f32 %v673_v22, 0.0  ;;  %v765_v22 = vld [vmem:[%s2414_s3 + $0x1c0] sm:$0xff] }
 0x194   :  { %v638_v36 = vpop.permute.xlu1 %637 }
 0x195   :  { %v1399_v37 = vpack.c.bf16 %v706_v34, %v705_v16  ;;  %v675_v38 = vadd.f32 %v638_v36, %v451_v12  ;;  %v733_v16 = vld [vmem:[%s2414_s3 + $0xc0] sm:$0xff]  ;;  %v767_v34 = vld [vmem:[%s2414_s3 + $0x1d0] sm:$0xff]  ;;  %v736_v36 = vld [vmem:[%s2414_s3 + $0xd8] sm:$0xff] }
 0x196   :  { %v769_v12 = vld [vmem:[%s2414_s3 + $0x1e0] sm:$0xff] }
 0x197   :  { %1400 = vmatpush1.bf16.msra.mxu0 %v1399_v37  ;;  %1466 = vmatpush1.bf16.msra.mxu1 %v1399_v37  ;;  %v707_v42 = vmax.f32 %v675_v38, 0.0  ;;  %v735_v37 = vld [vmem:[%s2414_s3 + $0xd0] sm:$0xff]  ;;  %v738_v38 = vld [vmem:[%s2414_s3 + $0xe8] sm:$0xff] }
 0x198   :  { %v643_v41 = vpop.permute.xlu1 %642  ;;  %1401 = vmatprep.subr.bf16.mxu0 %v1532_v31  ;;  %1451 = vmatprep.subr.bf16.mxu1 %v1532_v31  ;;  %v746_v31 = vld [vmem:[%s2414_s3 + $0x128] sm:$0xff] }
 0x199   :  { %v676_v45 = vadd.f32 %v643_v41, %v452_v59  ;;  %v772_v59 = vld [vmem:[%s2414_s3 + $0x1f8] sm:$0xff]  ;;  %v737_v41 = vld [vmem:[%s2414_s3 + $0xe0] sm:$0xff] }
 0x19b   :  { %v708_v3 = vmax.f32 %v676_v45, 0.0  ;;  %v771_v45 = vld [vmem:[%s2414_s3 + $0x1f0] sm:$0xff] }
 0x19d   :  { %v1402_v54 = vpack.c.bf16 %v708_v3, %v707_v42  ;;  %v740_v42 = vld [vmem:[%s2414_s3 + $0xf8] sm:$0xff]  ;;  %v739_v3 = vld [vmem:[%s2414_s3 + $0xf0] sm:$0xff] }
 0x19f   :  { %1403 = vmatpush1.bf16.msra.mxu0 %v1402_v54  ;;  %1467 = vmatpush1.bf16.msra.mxu1 %v1402_v54  ;;  %v742_v54 = vld [vmem:[%s2414_s3 + $0x108] sm:$0xff] }
 0x1a2   :  { %1030 = vmatmul.mubr.f32.vlgmr.msra.gmra.mrb[0].mxu0 %v709_v18  ;;  %1115 = vmatmul.mubr.f32.vlgmr.msra.gmra.mrb[0].mxu1 %v743_v46  ;;  %v741_v18 = vld [vmem:[%s2414_s3 + $0x100] sm:$0xff]  ;;  %v2337_v46 = vpop.permute.xlu0 %887 }
 0x1a3   :  { %1034 = vmatprep.mubr.f32.mxu0 %v712_v26  ;;  %1119 = vmatprep.mubr.f32.mxu1 %v746_v31  ;;  %v2339_v26 = vpop.permute.xlu1 %892 }
 0x1a6   :  { %1035 = vmatmul.mubr.f32.gmra.mrb[2].mxu0 %v711_v60  ;;  %1120 = vmatmul.mubr.f32.gmra.mrb[2].mxu1 %v745_v55  ;;  %v808_v31 = vpop.permute.xlu0 %807 }
 0x1a7   :  { %1039 = vmatprep.mubr.f32.mxu0 %v714_v47  ;;  %1124 = vmatprep.mubr.f32.mxu1 %v748_v48  ;;  %v813_v60 = vpop.permute.xlu1 %812  ;;  %v2344_v48 = vld [vmem:[%s2416_s5] sm:$0x3] }
 0x1aa   :  { %1040 = vmatmul.mubr.f32.gmra.mrb[4].mxu0 %v713_v24  ;;  %1125 = vmatmul.mubr.f32.gmra.mrb[4].mxu1 %v747_v51  ;;  %v898_v55 = vpop.permute.xlu0 %897  ;;  %v1233_v51 = vrot.slane %v2344_v48, %v387_v43 }
 0x1ab   :  { %1044 = vmatprep.mubr.f32.mxu0 %v716_v0  ;;  %1129 = vmatprep.mubr.f32.mxu1 %v750_v53  ;;  %v903_v47 = vpop.permute.xlu1 %902 }
 0x1ae   :  { %1045 = vmatmul.mubr.f32.gmra.mrb[6].mxu0 %v715_v57  ;;  %1130 = vmatmul.mubr.f32.gmra.mrb[6].mxu1 %v749_v58  ;;  %v818_v24 = vpop.permute.xlu0 %817 }
 0x1af   :  { %1049 = vmatprep.mubr.f32.mxu0 %v718_v4  ;;  %1134 = vmatprep.mubr.f32.mxu1 %v752_v13  ;;  %v823_v0 = vpop.permute.xlu1 %822 }
 0x1b2   :  { %1050 = vmatmul.mubr.f32.gmra.mrb[8].mxu0 %v717_v14  ;;  %1135 = vmatmul.mubr.f32.gmra.mrb[8].mxu1 %v751_v23  ;;  %v908_v53 = vpop.permute.xlu0 %907 }
 0x1b3   :  { %1054 = vmatprep.mubr.f32.mxu0 %v720_v2  ;;  %1139 = vmatprep.mubr.f32.mxu1 %v754_v30  ;;  %v913_v57 = vpop.permute.xlu1 %912 }
 0x1b6   :  { %1055 = vmatmul.mubr.f32.gmra.mrb[10].mxu0 %v719_v8  ;;  %1140 = vmatmul.mubr.f32.gmra.mrb[10].mxu1 %v753_v62  ;;  %v828_v58 = vpop.permute.xlu0 %827 }
 0x1b7   :  { %1059 = vmatprep.mubr.f32.mxu0 %v722_v21  ;;  %1144 = vmatprep.mubr.f32.mxu1 %v756_v19  ;;  %v833_v4 = vpop.permute.xlu1 %832 }
 0x1ba   :  { %1060 = vmatmul.mubr.f32.gmra.mrb[12].mxu0 %v721_v1  ;;  %1145 = vmatmul.mubr.f32.gmra.mrb[12].mxu1 %v755_v56  ;;  %v918_v13 = vpop.permute.xlu0 %917 }
 0x1bb   :  { %1064 = vmatprep.mubr.f32.mxu0 %v724_v7  ;;  %1149 = vmatprep.mubr.f32.mxu1 %v758_v5  ;;  %v923_v14 = vpop.permute.xlu1 %922 }
 0x1be   :  { %1065 = vmatmul.mubr.f32.gmra.mrb[14].mxu0 %v723_v6  ;;  %1150 = vmatmul.mubr.f32.gmra.mrb[14].mxu1 %v757_v10  ;;  %v2349_v23 = vpop.permute.xlu0 %837 }
 0x1bf   :  { %1069 = vmatprep.mubr.f32.mxu0 %v726_v15  ;;  %1154 = vmatprep.mubr.f32.mxu1 %v760_v17  ;;  %v2351_v2 = vpop.permute.xlu1 %842 }
 0x1c2   :  { %1070 = vmatmul.mubr.f32.gmra.mrb[16].mxu0 %v725_v27  ;;  %1155 = vmatmul.mubr.f32.gmra.mrb[16].mxu1 %v759_v25  ;;  %v2355_v19 = vpop.permute.xlu0 %927 }
 0x1c3   :  { %1074 = vmatprep.mubr.f32.mxu0 %v728_v63  ;;  %1159 = vmatprep.mubr.f32.mxu1 %v762_v33  ;;  %v2357_v10 = vpop.permute.xlu1 %932 }
 0x1c6   :  { %1075 = vmatmul.mubr.f32.gmra.mrb[18].mxu0 %v727_v49  ;;  %1160 = vmatmul.mubr.f32.gmra.mrb[18].mxu1 %v761_v61 }
 0x1c7   :  { %1079 = vmatprep.mubr.f32.mxu0 %v730_v20  ;;  %1164 = vmatprep.mubr.f32.mxu1 %v764_v9  ;;  %v848_v9 = vpop.permute.xlu0 %847 }
 0x1ca   :  { %1080 = vmatmul.mubr.f32.gmra.mrb[20].mxu0 %v729_v35  ;;  %1165 = vmatmul.mubr.f32.gmra.mrb[20].mxu1 %v763_v11 }
 0x1cb   :  { %1084 = vmatprep.mubr.f32.mxu0 %v732_v40  ;;  %1169 = vmatprep.mubr.f32.mxu1 %v766_v28 }
 0x1ce   :  { %1085 = vmatmul.mubr.f32.gmra.mrb[22].mxu0 %v731_v50  ;;  %1170 = vmatmul.mubr.f32.gmra.mrb[22].mxu1 %v765_v22 }
 0x1cf   :  { %1089 = vmatprep.mubr.f32.mxu0 %v734_v29  ;;  %1174 = vmatprep.mubr.f32.mxu1 %v768_v32 }
 0x1d2   :  { %1090 = vmatmul.mubr.f32.gmra.mrb[24].mxu0 %v733_v16  ;;  %1175 = vmatmul.mubr.f32.gmra.mrb[24].mxu1 %v767_v34  ;;  %v853_v34 = vpop.permute.xlu1 %852 }
 0x1d3   :  { %1094 = vmatprep.mubr.f32.mxu0 %v736_v36  ;;  %1179 = vmatprep.mubr.f32.mxu1 %v770_v52 }
 0x1d6   :  { %1095 = vmatmul.mubr.f32.gmra.mrb[26].mxu0 %v735_v37  ;;  %1180 = vmatmul.mubr.f32.gmra.mrb[26].mxu1 %v769_v12 }
 0x1d7   :  { %1099 = vmatprep.mubr.f32.mxu0 %v738_v38  ;;  %1184 = vmatprep.mubr.f32.mxu1 %v772_v59 }
 0x1da   :  { %1100 = vmatmul.mubr.f32.gmra.mrb[28].mxu0 %v737_v41  ;;  %1185 = vmatmul.mubr.f32.gmra.mrb[28].mxu1 %v771_v45 }
 0x1db   :  { %1104 = vmatprep.mubr.f32.mxu0 %v740_v42  ;;  %1300 = vmatprep.mubr.f32.mxu1 %v1233_v51 }
 0x1de   :  { %1105 = vmatmul.mubr.f32.gmra.mrb[30].mxu0 %v739_v3  ;;  %v938_v3 = vpop.permute.xlu0 %937 }
 0x1df   :  { %1109 = vmatprep.mubr.f32.mxu0 %v742_v54 }
 0x1e2   :  { %1110 = vmatmul.mubr.f32.gmra.mrb[32].mxu0 %v741_v18 }
 0x275   :  { %v1031_v30 = vpop.f32.mrb[0].mxu0  ;;  %v2353_v8 = vpop.f32.mrb[0].mxu1 }
 0x276   :  { %v1033_v62 = vpop.f32.mrb[1].mxu0  ;;  %v1118_v21 = vpop.f32.mrb[1].mxu1  ;;  %v1032_v43 = vadd.f32 %v1031_v30, %v808_v31 }
 0x277   :  { %v943_v30 = vpop.permute.xlu1 %942 }
 0x278   :  { %v1190_v15 = vmax.f32 %v1032_v43, 0.0 }
 0x279   :  { %v1036_v1 = vpop.f32.mrb[2].mxu0  ;;  %v1121_v56 = vpop.f32.mrb[2].mxu1 }
 0x27a   :  { %v1037_v7 = vadd.f32 %v1036_v1, %v813_v60  ;;  %v1038_v5 = vpop.f32.mrb[3].mxu0  ;;  %v1123_v6 = vpop.f32.mrb[3].mxu1  ;;  %v1122_v27 = vadd.f32 %v1121_v56, %v898_v55 }
 0x27c   :  { %v1191_v17 = vmax.f32 %v1037_v7, 0.0  ;;  %v1208_v35 = vmax.f32 %v1122_v27, 0.0 }
 0x27d   :  { %v1041_v25 = vpop.f32.mrb[4].mxu0  ;;  %v1126_v63 = vpop.f32.mrb[4].mxu1 }
 0x27e   :  { %v2359_v33 = vpack.c.bf16 %v1191_v17, %v1190_v15  ;;  %v1127_v49 = vadd.f32 %v1126_v63, %v903_v47  ;;  %v1043_v61 = vpop.f32.mrb[5].mxu0  ;;  %v1128_v20 = vpop.f32.mrb[5].mxu1  ;;  %v1042_v11 = vadd.f32 %v1041_v25, %v818_v24 }
 0x27f   :  { %v863_v61 = vpop.permute.xlu1 %862 }
 0x280   :  { %v1209_v40 = vmax.f32 %v1127_v49, 0.0  ;;  %v1192_v36 = vmax.f32 %v1042_v11, 0.0 }
 0x281   :  { %v1046_v28 = vpop.f32.mrb[6].mxu0  ;;  %v1131_v50 = vpop.f32.mrb[6].mxu1 }
 0x282   :  { %v2361_v22 = vpack.c.bf16 %v1209_v40, %v1208_v35  ;;  %v1047_v29 = vadd.f32 %v1046_v28, %v823_v0  ;;  %v1048_v32 = vpop.f32.mrb[7].mxu0  ;;  %v1133_v16 = vpop.f32.mrb[7].mxu1  ;;  %v1132_v37 = vadd.f32 %v1131_v50, %v908_v53 }
 0x284   :  { %v1193_v52 = vmax.f32 %v1047_v29, 0.0  ;;  %v1210_v54 = vmax.f32 %v1132_v37, 0.0 }
 0x285   :  { %v1051_v12 = vpop.f32.mrb[8].mxu0  ;;  %v1136_v38 = vpop.f32.mrb[8].mxu1 }
 0x286   :  { %v2363_v59 = vpack.c.bf16 %v1193_v52, %v1192_v36  ;;  %v1137_v41 = vadd.f32 %v1136_v38, %v913_v57  ;;  %v1053_v45 = vpop.f32.mrb[9].mxu0  ;;  %v1138_v42 = vpop.f32.mrb[9].mxu1  ;;  %v1052_v18 = vadd.f32 %v1051_v12, %v828_v58 }
 0x287   :  { %v858_v58 = vpop.permute.xlu0 %857 }
 0x288   :  { %v1211_v31 = vmax.f32 %v1137_v41, 0.0  ;;  %v1194_v53 = vmax.f32 %v1052_v18, 0.0 }
 0x289   :  { %v1056_v60 = vpop.f32.mrb[10].mxu0  ;;  %v1141_v55 = vpop.f32.mrb[10].mxu1 }
 0x28a   :  { %v2365_v47 = vpack.c.bf16 %v1211_v31, %v1210_v54  ;;  %v1057_v24 = vadd.f32 %v1056_v60, %v833_v4  ;;  %v1058_v51 = vpop.f32.mrb[11].mxu0  ;;  %v1143_v0 = vpop.f32.mrb[11].mxu1  ;;  %v1142_v21 = vadd.f32 %v1141_v55, %v918_v13 }
 0x28b   :  { %v948_v32 = vpop.permute.xlu0 %947 }
 0x28c   :  { %v1195_v62 = vmax.f32 %v1057_v24, 0.0  ;;  %v1212_v6 = vmax.f32 %v1142_v21, 0.0 }
 0x28d   :  { %v1061_v43 = vpop.f32.mrb[12].mxu0  ;;  %v1146_v1 = vpop.f32.mrb[12].mxu1 }
 0x28e   :  { %v2367_v57 = vpack.c.bf16 %v1195_v62, %v1194_v53  ;;  %v1147_v56 = vadd.f32 %v1146_v1, %v923_v14  ;;  %v1063_v7 = vpop.f32.mrb[13].mxu0  ;;  %v1148_v5 = vpop.f32.mrb[13].mxu1  ;;  %v1062_v15 = vadd.f32 %v1061_v43, %v2349_v23 }
 0x290   :  { %v1213_v17 = vmax.f32 %v1147_v56, 0.0  ;;  %v1196_v20 = vmax.f32 %v1062_v15, 0.0 }
 0x291   :  { %v1066_v27 = vpop.f32.mrb[14].mxu0  ;;  %v1151_v4 = vpop.f32.mrb[14].mxu1 }
 0x292   :  { %v2370_v25 = vpack.c.bf16 %v1213_v17, %v1212_v6  ;;  %v1067_v63 = vadd.f32 %v1066_v27, %v2351_v2  ;;  %v1068_v49 = vpop.f32.mrb[15].mxu0  ;;  %v1153_v13 = vpop.f32.mrb[15].mxu1  ;;  %v1152_v14 = vadd.f32 %v1151_v4, %v2355_v19 }
 0x293   :  { %v953_v19 = vpop.permute.xlu1 %952 }
 0x294   :  { %v1197_v35 = vmax.f32 %v1067_v63, 0.0  ;;  %v1214_v16 = vmax.f32 %v1152_v14, 0.0 }
 0x295   :  { %v1071_v11 = vpop.f32.mrb[16].mxu0  ;;  %v1156_v40 = vpop.f32.mrb[16].mxu1 }
 0x296   :  { %v2374_v28 = vpack.c.bf16 %v1197_v35, %v1196_v20  ;;  %v1157_v23 = vadd.f32 %v1156_v40, %v2357_v10  ;;  %v1073_v50 = vpop.f32.mrb[17].mxu0  ;;  %v1158_v29 = vpop.f32.mrb[17].mxu1  ;;  %v1072_v36 = vadd.f32 %v1071_v11, %v848_v9 }
 0x297   :  { %v868_v9 = vpop.permute.xlu0 %867  ;;  %v873_v5 = vpop.permute.xlu1 %872 }
 0x298   :  { %v1215_v52 = vmax.f32 %v1157_v23, 0.0  ;;  %v1198_v42 = vmax.f32 %v1072_v36, 0.0 }
 0x299   :  { %v1076_v2 = vpop.f32.mrb[18].mxu0  ;;  %v1161_v37 = vpop.f32.mrb[18].mxu1 }
 0x29a   :  { %v2377_v12 = vpack.c.bf16 %v1215_v52, %v1214_v16  ;;  %v1077_v38 = vadd.f32 %v1076_v2, %v853_v34  ;;  %v1078_v41 = vpop.f32.mrb[19].mxu0  ;;  %v1163_v45 = vpop.f32.mrb[19].mxu1  ;;  %v1162_v18 = vadd.f32 %v1161_v37, %v938_v3 }
 0x29b   :  { %v958_v13 = vpop.permute.xlu0 %957  ;;  %v963_v29 = vpop.permute.xlu1 %962 }
 0x29c   :  { %v1199_v54 = vmax.f32 %v1077_v38, 0.0  ;;  %v1216_v0 = vmax.f32 %v1162_v18, 0.0 }
 0x29d   :  { %v1081_v31 = vpop.f32.mrb[20].mxu0  ;;  %v1166_v60 = vpop.f32.mrb[20].mxu1 }
 0x29e   :  { %v2379_v10 = vpack.c.bf16 %v1199_v54, %v1198_v42  ;;  %v1167_v55 = vadd.f32 %v1166_v60, %v943_v30  ;;  %v1083_v24 = vpop.f32.mrb[21].mxu0  ;;  %v1168_v51 = vpop.f32.mrb[21].mxu1  ;;  %v1082_v53 = vadd.f32 %v1081_v31, %v858_v58 }
 0x29f   :  { %v883_v31 = vpop.permute.xlu1 %882 }
 0x2a0   :  { %v1217_v62 = vmax.f32 %v1167_v55, 0.0  ;;  %v1200_v6 = vmax.f32 %v1082_v53, 0.0 }
 0x2a1   :  { %v1086_v21 = vpop.f32.mrb[22].mxu0  ;;  %v1171_v43 = vpop.f32.mrb[22].mxu1 }
 0x2a2   :  { %v1424_v34 = vpack.c.bf16 %v1217_v62, %v1216_v0  ;;  %v1087_v1 = vadd.f32 %v1086_v21, %v863_v61  ;;  %v1088_v56 = vpop.f32.mrb[23].mxu0  ;;  %v1173_v7 = vpop.f32.mrb[23].mxu1  ;;  %v1172_v15 = vadd.f32 %v1171_v43, %v948_v32 }
 0x2a4   :  { %v1201_v3 = vmax.f32 %v1087_v1, 0.0  ;;  %v1218_v20 = vmax.f32 %v1172_v15, 0.0 }
 0x2a5   :  { %v1091_v17 = vpop.f32.mrb[24].mxu0  ;;  %v1176_v27 = vpop.f32.mrb[24].mxu1 }
 0x2a6   :  { %v1426_v4 = vpack.c.bf16 %v1201_v3, %v1200_v6  ;;  %v1177_v30 = vadd.f32 %v1176_v27, %v953_v19  ;;  %v1093_v63 = vpop.f32.mrb[25].mxu0  ;;  %v1178_v49 = vpop.f32.mrb[25].mxu1  ;;  %v1092_v58 = vadd.f32 %v1091_v17, %v868_v9  ;;  %v1117_v9 = vadd.f32 %v2353_v8, %v2339_v26 }
 0x2a7   :  { %v878_v19 = vpop.permute.xlu0 %877 }
 0x2a8   :  { %v1219_v35 = vmax.f32 %v1177_v30, 0.0  ;;  %v1202_v16 = vmax.f32 %v1092_v58, 0.0  ;;  %v1207_v56 = vmax.f32 %v1117_v9, 0.0 }
 0x2a9   :  { %v1096_v14 = vpop.f32.mrb[26].mxu0  ;;  %v1181_v11 = vpop.f32.mrb[26].mxu1 }
 0x2aa   :  { %v1428_v40 = vpack.c.bf16 %v1219_v35, %v1218_v20  ;;  %v1097_v61 = vadd.f32 %v1096_v14, %v873_v5  ;;  %v1098_v23 = vpop.f32.mrb[27].mxu0  ;;  %v1183_v50 = vpop.f32.mrb[27].mxu1  ;;  %v1182_v32 = vadd.f32 %v1181_v11, %v958_v13 }
 0x2ac   :  { %v1203_v36 = vmax.f32 %v1097_v61, 0.0  ;;  %v1220_v42 = vmax.f32 %v1182_v32, 0.0 }
 0x2ad   :  { %v1101_v52 = vpop.f32.mrb[28].mxu0  ;;  %v1186_v2 = vpop.f32.mrb[28].mxu1 }
 0x2ae   :  { %v1430_v37 = vpack.c.bf16 %v1203_v36, %v1202_v16  ;;  %v1187_v38 = vadd.f32 %v1186_v2, %v963_v29  ;;  %v1103_v41 = vpop.f32.mrb[29].mxu0  ;;  %v1188_v45 = vpop.f32.mrb[29].mxu1  ;;  %v1102_v54 = vadd.f32 %v1101_v52, %v878_v19 }
 0x2b0   :  { %v1221_v18 = vmax.f32 %v1187_v38, 0.0  ;;  %v1204_v0 = vmax.f32 %v1102_v54, 0.0 }
 0x2b1   :  { %v1106_v60 = vpop.f32.mrb[30].mxu0 }
 0x2b2   :  { %v1432_v55 = vpack.c.bf16 %v1221_v18, %v1220_v42  ;;  %v1107_v24 = vadd.f32 %v1106_v60, %v883_v31  ;;  %v1108_v51 = vpop.f32.mrb[31].mxu0 }
 0x2b4   :  { %v1205_v53 = vmax.f32 %v1107_v24, 0.0 }
 0x2b5   :  { %v1111_v62 = vpop.f32.mrb[32].mxu0 }
 0x2b6   :  { %v1434_v21 = vpack.c.bf16 %v1205_v53, %v1204_v0  ;;  %v1112_v43 = vadd.f32 %v1111_v62, %v2337_v46  ;;  %v1113_v1 = vpop.f32.mrb[33].mxu0  ;;  %v1229_v46 = vrot.slane %v2344_v48, %v223_v44 }
 0x2b8   :  { %v1206_v7 = vmax.f32 %v1112_v43, 0.0 }
 0x2ba   :  { %v1404_v5 = vpack.c.bf16 %v1207_v56, %v1206_v7 }
 0x2bc   :  { %1405 = vmatprep.subr.bf16.mxu1 %v1404_v5 }
 0x2bd   :  { %1407 = vmatpush3.bf16.msra.mxu1 %v2359_v33  ;;  %v1224_v33 = vstv %s2417_s6 }
 0x2be   :  { %1409 = vmatprep.subr.bf16.mxu1 %v2361_v22 }
 0x2c1   :  { %1411 = vmatpush3.bf16.msra.mxu1 %v2363_v59 }
 0x2c2   :  { %1413 = vmatprep.subr.bf16.mxu1 %v2365_v47 }
 0x2c5   :  { %1415 = vmatpush3.bf16.msra.mxu1 %v2367_v57 }
 0x2c6   :  { %1417 = vmatprep.subr.bf16.mxu1 %v2370_v25 }
 0x2c9   :  { %1419 = vmatpush3.bf16.msra.mxu1 %v2374_v28 }
 0x2ca   :  { %1421 = vmatprep.subr.bf16.mxu1 %v2377_v12 }
 0x2cd   :  { %1423 = vmatpush3.bf16.msra.mxu1 %v2379_v10 }
 0x2ce   :  { %1425 = vmatprep.subr.bf16.mxu1 %v1424_v34 }
 0x2d1   :  { %1427 = vmatpush3.bf16.msra.mxu1 %v1426_v4 }
 0x2d2   :  { %1429 = vmatprep.subr.bf16.mxu1 %v1428_v40 }
 0x2d5   :  { %1431 = vmatpush3.bf16.msra.mxu1 %v1430_v37 }
 0x2d6   :  { %1433 = vmatprep.subr.bf16.mxu1 %v1432_v55 }
 0x2d9   :  { %1435 = vmatpush3.bf16.msra.mxu1 %v1434_v21 }
 0x2dc   :  { %1301 = vmatmul.mubr.f32.vlgmr.msra.gmra.mrb[30].mxu1 %v1229_v46 }
 0x3af   :  { %v1353_v26 = vpop.f32.mrb[30].mxu1 }
 0x3b0   :  { %v1354_v8 = vpop.f32.mrb[31].mxu1 }
 0x3b1   :  { %v1355_v22 = vadd.f32 %v1354_v8, %v1353_v26 }
 0x3b3   :  { %v1303_v59 = vadd.f32 %v1355_v22, %v1224_v33 }
 0x3b5   :  { %1306 = vst [vmem:[#allocation3] sm:$0x1] %v1303_v59 }
 0x3b6   :  { %1517 = shalt.err (!%p1514_p4)
}
 0x3b7   :  { %s1518_s28 = scalar_lea.hbm %s2418_s7, 16 }
 0x3b8   :  { %p1519_p5 = scmp.ne.s32.totalorder %s2418_s7, %s1518_s28  ;;  %p1522_p6 = scmp.lt.u32.totalorder %s1518_s28, %s2418_s7 }
 0x3ba   :  { %p1524_p7 = pnand %p1522_p6, %p1519_p5 }
 0x3bc   :  { %1527 = shalt.err (!%p1524_p7)
}
 0x3bd   :  { %1316 = dma.vmem_to_hbm [thread:$0]  %s1314_s24, 16, %s2418_s7, [#allocation4]  }
 0x3be   :  { %1528 = dma.done.wait [#allocation4], 16  }
 0x3bf   :  { %1529 = vsyncadd [#allocation4], 4294967280 }
 0x3c0   :  { %1320 = vsyncpa [#allocation4], 1 }

</bundles_post_ra>
